<compile_context>
chip_gen: v6e
topology: v6e:2x2x1
jax: 0.10.0
libtpu: 0.0.40
codegen_flags: <defaults>
</compile_context>

<pallas_src>
import math
import jax
import jax.numpy as jnp
from jax import lax
from jax.experimental import pallas as pl
from jax.experimental.pallas import tpu as pltpu

# ---- model hyper-parameters (small, consistent with the module) -------------
NUM_LAYERS = 2
D_MODEL = 32
HEADS = 4
D_HEAD = D_MODEL // HEADS
D_FF = 64
EPS = 1e-6
NEG_INF = -1e18          # onmt MultiHeadedAttention masked_fill value
VOCAB = 16
PADDING_IDX = 1          # embeddings.word_padding_idx
SEQ = 8
BATCH = 2

# packed-slab lane offsets (weights-A slab: [Wqkv | Wo | W1] along lanes)
_OFF_WO = 3 * D_MODEL
_OFF_W1 = 4 * D_MODEL
_WA_WIDTH = 4 * D_MODEL + D_FF      # 192


# ------------------------------ kernel ----------------------------------------
def _layer_norm(x, g, b):
    mu = jnp.mean(x, axis=-1, keepdims=True)
    var = jnp.mean((x - mu) ** 2, axis=-1, keepdims=True)
    return (x - mu) * lax.rsqrt(var + EPS) * g + b


def encoder_kernel(x_ref, kb_ref, wa_ref, w2_ref, vb_ref, fln_ref, out_ref):
    """One batch element per grid step; whole layer stack in VMEM.

    x_ref  : (1, S, D)          activations of this batch element
    kb_ref : (1, 1, S)          additive key bias (0 valid / -1e18 padded)
    wa_ref : (L, D, 192)        [Wqkv(96, scale folded into Wq) | Wo(32) | W1(64)]
    w2_ref : (L, D_FF, D)       W2
    vb_ref : (L, 8, 128)        rows: ln1_g, ln1_b, bqkv(96), bo, ln2_g, ln2_b, b1(64), b2
    fln_ref: (2, 128)           rows: final gamma, final beta
    """
    x = x_ref[0]                          # (S, D)
    key_bias = kb_ref[0]                  # (1, S)

    for li in range(NUM_LAYERS):          # short static unroll (L == 2)
        wa = wa_ref[li]                   # (D, 192)
        w2 = w2_ref[li]                   # (D_FF, D)
        vv = vb_ref[li]                   # (8, 128)

        wqkv = wa[:, :3 * D_MODEL]        # (D, 3D)
        wo = wa[:, _OFF_WO:_OFF_WO + D_MODEL]
        w1 = wa[:, _OFF_W1:_OFF_W1 + D_FF]

        ln1_g = vv[0:1, :D_MODEL]
        ln1_b = vv[1:2, :D_MODEL]
        bqkv = vv[2:3, :3 * D_MODEL]
        bo = vv[3:4, :D_MODEL]
        ln2_g = vv[4:5, :D_MODEL]
        ln2_b = vv[5:6, :D_MODEL]
        b1 = vv[6:7, :D_FF]
        b2 = vv[7:8, :D_MODEL]

        # ---- self-attention sub-layer (pre-norm) ----
        xn = _layer_norm(x, ln1_g, ln1_b)                                   # (S, D)
        qkv = jnp.dot(xn, wqkv, preferred_element_type=jnp.float32) + bqkv  # (S, 3D)

        ctx_heads = []
        for h in range(HEADS):            # per-head attention core (lane slices)
            qh = qkv[:, h * D_HEAD:(h + 1) * D_HEAD]                        # (S, Dh), pre-scaled
            kh = qkv[:, D_MODEL + h * D_HEAD:D_MODEL + (h + 1) * D_HEAD]
            vh = qkv[:, 2 * D_MODEL + h * D_HEAD:2 * D_MODEL + (h + 1) * D_HEAD]
            sh = lax.dot_general(qh, kh, (((1,), (1,)), ((), ())),
                                 preferred_element_type=jnp.float32)        # (S, S)
            sh = sh + key_bias
            sh = sh - jnp.max(sh, axis=-1, keepdims=True)
            eh = jnp.exp(sh)
            ah = eh * pl.reciprocal(jnp.sum(eh, axis=-1, keepdims=True), approx=True)
            ctx_heads.append(jnp.dot(ah, vh, preferred_element_type=jnp.float32))
        ctx = jnp.concatenate(ctx_heads, axis=-1)                           # (S, D)

        attn_out = jnp.dot(ctx, wo, preferred_element_type=jnp.float32) + bo
        x = attn_out + x                  # dropout(p) in eval mode == identity

        # ---- position-wise feed-forward sub-layer (pre-norm) ----
        xn2 = _layer_norm(x, ln2_g, ln2_b)
        h1 = jnp.maximum(
            jnp.dot(xn2, w1, preferred_element_type=jnp.float32) + b1, 0.0)
        ff = jnp.dot(h1, w2, preferred_element_type=jnp.float32) + b2
        x = ff + x

    # ---- final LayerNorm, fused ----
    fln = fln_ref[...]
    out_ref[0] = _layer_norm(x, fln[0:1, :D_MODEL], fln[1:2, :D_MODEL])


# ------------------------------ wrapper ----------------------------------------
def run_encoder(x, key_bias, wa, w2, vb, fln):
    """grid over batch; weights DMA'd once (constant index_maps) and VMEM-resident."""
    B, S, D = x.shape
    return pl.pallas_call(
        encoder_kernel,
        out_shape=jax.ShapeDtypeStruct((B, S, D), jnp.float32),
        grid=(B,),
        in_specs=[
            pl.BlockSpec((1, S, D), lambda b: (b, 0, 0)),      # activations
            pl.BlockSpec((1, 1, S), lambda b: (b, 0, 0)),      # key-padding bias
            pl.BlockSpec(wa.shape, lambda b: (0, 0, 0)),       # weight slab A
            pl.BlockSpec(w2.shape, lambda b: (0, 0, 0)),       # W2 slab
            pl.BlockSpec(vb.shape, lambda b: (0, 0, 0)),       # bias / LN slab
            pl.BlockSpec(fln.shape, lambda b: (0, 0)),         # final LN
        ],
        out_specs=pl.BlockSpec((1, S, D), lambda b: (b, 0, 0)),
        compiler_params=pltpu.CompilerParams(dimension_semantics=("parallel",)),
    )(x, key_bias, wa, w2, vb, fln)


# ------------------------------ parameters -------------------------------------
def init_params(key):
    def nrm(k, shape, scale=0.02):
        return (scale * jax.random.normal(k, shape)).astype(jnp.float32)

    keys = jax.random.split(key, 1 + NUM_LAYERS)
    emb_table = nrm(keys[0], (VOCAB, D_MODEL)).at[PADDING_IDX].set(0.0)

    layers = []
    for li in range(NUM_LAYERS):
        lk = jax.random.split(keys[1 + li], 6)
        ones = jnp.ones((1, D_MODEL), jnp.float32)
        zeros = jnp.zeros((1, D_MODEL), jnp.float32)
        layers.append(dict(
            ln1_g=ones, ln1_b=zeros,
            wq=nrm(lk[0], (D_MODEL, D_MODEL)), bq=jnp.zeros((1, D_MODEL), jnp.float32),
            wk=nrm(lk[1], (D_MODEL, D_MODEL)), bk=jnp.zeros((1, D_MODEL), jnp.float32),
            wv=nrm(lk[2], (D_MODEL, D_MODEL)), bv=jnp.zeros((1, D_MODEL), jnp.float32),
            wo=nrm(lk[3], (D_MODEL, D_MODEL)), bo=zeros,
            ln2_g=ones, ln2_b=zeros,
            w1=nrm(lk[4], (D_MODEL, D_FF)), b1=jnp.zeros((1, D_FF), jnp.float32),
            w2=nrm(lk[5], (D_FF, D_MODEL)), b2=zeros,
        ))

    final_ln = (jnp.ones((1, D_MODEL), jnp.float32),
                jnp.zeros((1, D_MODEL), jnp.float32))
    return emb_table, layers, final_ln


def pack_params(layers, final_ln):
    """Pack per-layer params into a few padded slabs; fold the softmax scale into Wq/bq."""
    scale = 1.0 / math.sqrt(D_HEAD)

    def row(v, width=128):
        v = v.reshape(1, -1)
        return jnp.pad(v, ((0, 0), (0, width - v.shape[1])))

    wa_l, w2_l, vb_l = [], [], []
    for p in layers:
        wqkv = jnp.concatenate([p['wq'] * scale, p['wk'], p['wv']], axis=1)   # (D, 3D)
        wa_l.append(jnp.concatenate([wqkv, p['wo'], p['w1']], axis=1))        # (D, 192)
        w2_l.append(p['w2'])
        bqkv = jnp.concatenate([p['bq'] * scale, p['bk'], p['bv']], axis=1)   # (1, 3D)
        vb_l.append(jnp.concatenate([
            row(p['ln1_g']), row(p['ln1_b']), row(bqkv), row(p['bo']),
            row(p['ln2_g']), row(p['ln2_b']), row(p['b1']), row(p['b2'])], axis=0))

    fg, fb = final_ln
    fln = jnp.concatenate([row(fg), row(fb)], axis=0)                         # (2, 128)
    return jnp.stack(wa_l), jnp.stack(w2_l), jnp.stack(vb_l), fln


def positional_encoding(max_len, dim):
    pos = jnp.arange(max_len, dtype=jnp.float32)[:, None]
    div = jnp.exp(jnp.arange(0, dim, 2, dtype=jnp.float32) * -(math.log(10000.0) / dim))
    pe = jnp.zeros((max_len, dim), jnp.float32)
    pe = pe.at[:, 0::2].set(jnp.sin(pos * div))
    pe = pe.at[:, 1::2].set(jnp.cos(pos * div))
    return pe


# ------------------------------ forward ----------------------------------------
def transformer_encoder_forward(src, lengths, params):
    """src: (S, B) int32 token ids (seq-major, like the PyTorch module)."""
    emb_table, layers, final_ln = params
    S, B = src.shape

    # embeddings (plain-JAX glue): word lookup * sqrt(d_model) + sinusoidal PE
    emb = emb_table[src] * math.sqrt(D_MODEL) + positional_encoding(S, D_MODEL)[:, None, :]
    emb = emb.astype(jnp.float32)                        # (S, B, D)

    out = jnp.transpose(emb, (1, 0, 2))                  # (B, S, D) == emb.transpose(0,1)

    # additive key-padding bias (B, 1, S): 0 for valid keys, -1e18 at padding
    words = src.T                                        # (B, S)
    key_bias = jnp.where(words == PADDING_IDX, NEG_INF, 0.0).astype(jnp.float32)[:, None, :]

    wa, w2, vb, fln = pack_params(layers, final_ln)
    y = run_encoder(out, key_bias, wa, w2, vb, fln)      # (B, S, D)

    memory_bank = jnp.transpose(y, (1, 0, 2))            # (S, B, D)
    return emb, memory_bank, lengths


transformer_encoder_forward_jit = jax.jit(transformer_encoder_forward)


# ------------------------------ pure-JAX reference ------------------------------
def reference_forward(src, lengths, params):
    emb_table, layers, final_ln = params
    S, B = src.shape
    emb = emb_table[src] * math.sqrt(D_MODEL) + positional_encoding(S, D_MODEL)[:, None, :]
    emb = emb.astype(jnp.float32)
    x = jnp.transpose(emb, (1, 0, 2))                    # (B, S, D)
    words = src.T
    kb = jnp.where(words == PADDING_IDX, NEG_INF, 0.0)[:, None, None, :]   # (B,1,1,S)

    def ln(t, g, b):
        mu = t.mean(-1, keepdims=True)
        var = ((t - mu) ** 2).mean(-1, keepdims=True)
        return (t - mu) / jnp.sqrt(var + EPS) * g + b

    for p in layers:
        xn = ln(x, p['ln1_g'], p['ln1_b'])
        q = xn @ p['wq'] + p['bq']
        k = xn @ p['wk'] + p['bk']
        v = xn @ p['wv'] + p['bv']

        def split(t):
            return t.reshape(B, S, HEADS, D_HEAD).transpose(0, 2, 1, 3)
        qh, kh, vh = split(q), split(k), split(v)
        s = jnp.einsum('bhqd,bhkd->bhqk', qh / math.sqrt(D_HEAD), kh) + kb
        a = jax.nn.softmax(s, axis=-1)
        ctx = jnp.einsum('bhqk,bhkd->bhqd', a, vh).transpose(0, 2, 1, 3).reshape(B, S, D_MODEL)
        x = ctx @ p['wo'] + p['bo'] + x

        xn2 = ln(x, p['ln2_g'], p['ln2_b'])
        x = jnp.maximum(xn2 @ p['w1'] + p['b1'], 0.0) @ p['w2'] + p['b2'] + x

    fg, fb = final_ln
    out = ln(x, fg, fb)
    return emb, jnp.transpose(out, (1, 0, 2)), lengths


# ------------------------------ main --------------------------------------------
if __name__ == "__main__":
    key = jax.random.PRNGKey(0)
    pkey, skey = jax.random.split(key)
    params = init_params(pkey)

    src = jax.random.randint(skey, (SEQ, BATCH), 0, VOCAB).astype(jnp.int32)
    # force some padding positions in batch element 0 to exercise the attention mask
    src = src.at[-2:, 0].set(PADDING_IDX)
    lengths = jnp.array([SEQ - 2, SEQ], dtype=jnp.int32)

    emb, memory_bank, lens = transformer_encoder_forward_jit(src, lengths, params)
    jax.block_until_ready((emb, memory_bank, lens))

    assert emb.shape == (SEQ, BATCH, D_MODEL)
    assert memory_bank.shape == (SEQ, BATCH, D_MODEL)
    assert bool(jnp.all(jnp.isfinite(memory_bank)))

    # correctness vs. pure-JAX reference (approx reciprocal -> loose tolerance)
    ref_emb, ref_mb, _ = reference_forward(src, lengths, params)
    assert bool(jnp.allclose(memory_bank, ref_mb, atol=2e-2, rtol=2e-2))
    assert bool(jnp.allclose(emb, ref_emb, atol=1e-5, rtol=1e-5))

    print("KERNEL_OK")
</pallas_src>

<mosaic_0001>
module attributes {stable_mosaic.version = 11 : i64} {
  func.func @encoder_kernel(%arg0: i32, %arg1: memref<1x8x32xf32, #tpu.memory_space<vmem>>, %arg2: memref<1x1x8xf32, #tpu.memory_space<vmem>>, %arg3: memref<2x32x192xf32, #tpu.memory_space<vmem>>, %arg4: memref<2x64x32xf32, #tpu.memory_space<vmem>>, %arg5: memref<2x8x128xf32, #tpu.memory_space<vmem>>, %arg6: memref<2x128xf32, #tpu.memory_space<vmem>>, %arg7: memref<1x8x32xf32, #tpu.memory_space<vmem>>) attributes {dimension_semantics = [#tpu.dimension_semantics<parallel>], iteration_bounds = array<i64: 2>, scalar_prefetch = 0 : i64, scratch_operands = 0 : i64, tpu.core_type = #tpu.core_type<tc>, window_params = [{transform_indices = @transform_0, window_bounds = array<i64: 1, 8, 32>}, {transform_indices = @transform_1, window_bounds = array<i64: 1, 1, 8>}, {pipeline_mode = #tpu.pipeline_mode<synchronous>, transform_indices = @transform_2, window_bounds = array<i64: 2, 32, 192>}, {pipeline_mode = #tpu.pipeline_mode<synchronous>, transform_indices = @transform_3, window_bounds = array<i64: 2, 64, 32>}, {pipeline_mode = #tpu.pipeline_mode<synchronous>, transform_indices = @transform_4, window_bounds = array<i64: 2, 8, 128>}, {pipeline_mode = #tpu.pipeline_mode<synchronous>, transform_indices = @transform_5, window_bounds = array<i64: 2, 128>}, {transform_indices = @transform_6, window_bounds = array<i64: 1, 8, 32>}]} {
    %c0 = arith.constant 0 : index
    %c0_0 = arith.constant 0 : index
    %c0_1 = arith.constant 0 : index
    %0 = vector.load %arg1[%c0, %c0_0, %c0_1] : memref<1x8x32xf32, #tpu.memory_space<vmem>>, vector<1x8x32xf32>
    %1 = vector.shape_cast %0 : vector<1x8x32xf32> to vector<8x32xf32>
    %c0_2 = arith.constant 0 : index
    %c0_3 = arith.constant 0 : index
    %c0_4 = arith.constant 0 : index
    %2 = vector.load %arg2[%c0_2, %c0_3, %c0_4] : memref<1x1x8xf32, #tpu.memory_space<vmem>>, vector<1x1x8xf32>
    %3 = vector.shape_cast %2 : vector<1x1x8xf32> to vector<1x8xf32>
    %c0_5 = arith.constant 0 : index
    %c0_6 = arith.constant 0 : index
    %c0_7 = arith.constant 0 : index
    %4 = vector.load %arg3[%c0_5, %c0_6, %c0_7] : memref<2x32x192xf32, #tpu.memory_space<vmem>>, vector<1x32x192xf32>
    %5 = vector.shape_cast %4 : vector<1x32x192xf32> to vector<32x192xf32>
    %c0_8 = arith.constant 0 : index
    %c0_9 = arith.constant 0 : index
    %c0_10 = arith.constant 0 : index
    %6 = vector.load %arg4[%c0_8, %c0_9, %c0_10] : memref<2x64x32xf32, #tpu.memory_space<vmem>>, vector<1x64x32xf32>
    %7 = vector.shape_cast %6 : vector<1x64x32xf32> to vector<64x32xf32>
    %c0_11 = arith.constant 0 : index
    %c0_12 = arith.constant 0 : index
    %c0_13 = arith.constant 0 : index
    %8 = vector.load %arg5[%c0_11, %c0_12, %c0_13] : memref<2x8x128xf32, #tpu.memory_space<vmem>>, vector<1x8x128xf32>
    %9 = vector.shape_cast %8 : vector<1x8x128xf32> to vector<8x128xf32>
    %10 = vector.extract_strided_slice %5 {offsets = [0, 0], sizes = [32, 96], strides = [1, 1]} : vector<32x192xf32> to vector<32x96xf32>
    %11 = vector.extract_strided_slice %5 {offsets = [0, 96], sizes = [32, 32], strides = [1, 1]} : vector<32x192xf32> to vector<32x32xf32>
    %12 = vector.extract_strided_slice %5 {offsets = [0, 128], sizes = [32, 64], strides = [1, 1]} : vector<32x192xf32> to vector<32x64xf32>
    %13 = vector.extract_strided_slice %9 {offsets = [0, 0], sizes = [1, 32], strides = [1, 1]} : vector<8x128xf32> to vector<1x32xf32>
    %14 = vector.extract_strided_slice %9 {offsets = [1, 0], sizes = [1, 32], strides = [1, 1]} : vector<8x128xf32> to vector<1x32xf32>
    %15 = vector.extract_strided_slice %9 {offsets = [2, 0], sizes = [1, 96], strides = [1, 1]} : vector<8x128xf32> to vector<1x96xf32>
    %16 = vector.extract_strided_slice %9 {offsets = [3, 0], sizes = [1, 32], strides = [1, 1]} : vector<8x128xf32> to vector<1x32xf32>
    %17 = vector.extract_strided_slice %9 {offsets = [4, 0], sizes = [1, 32], strides = [1, 1]} : vector<8x128xf32> to vector<1x32xf32>
    %18 = vector.extract_strided_slice %9 {offsets = [5, 0], sizes = [1, 32], strides = [1, 1]} : vector<8x128xf32> to vector<1x32xf32>
    %19 = vector.extract_strided_slice %9 {offsets = [6, 0], sizes = [1, 64], strides = [1, 1]} : vector<8x128xf32> to vector<1x64xf32>
    %20 = vector.extract_strided_slice %9 {offsets = [7, 0], sizes = [1, 32], strides = [1, 1]} : vector<8x128xf32> to vector<1x32xf32>
    %cst = arith.constant dense<0.000000e+00> : vector<8xf32>
    %21 = vector.multi_reduction <add>, %1, %cst [1] : vector<8x32xf32> to vector<8xf32>
    %22 = vector.shape_cast %21 : vector<8xf32> to vector<8x1xf32>
    %cst_14 = arith.constant 3.200000e+01 : f32
    %23 = vector.broadcast %cst_14 : f32 to vector<8x1xf32>
    %24 = arith.divf %22, %23 : vector<8x1xf32>
    %25 = vector.broadcast %24 : vector<8x1xf32> to vector<8x32xf32>
    %26 = arith.subf %1, %25 : vector<8x32xf32>
    %27 = arith.mulf %26, %26 : vector<8x32xf32>
    %cst_15 = arith.constant dense<0.000000e+00> : vector<8xf32>
    %28 = vector.multi_reduction <add>, %27, %cst_15 [1] : vector<8x32xf32> to vector<8xf32>
    %29 = vector.shape_cast %28 : vector<8xf32> to vector<8x1xf32>
    %cst_16 = arith.constant 3.200000e+01 : f32
    %30 = vector.broadcast %cst_16 : f32 to vector<8x1xf32>
    %31 = arith.divf %29, %30 : vector<8x1xf32>
    %32 = vector.broadcast %24 : vector<8x1xf32> to vector<8x32xf32>
    %33 = arith.subf %1, %32 : vector<8x32xf32>
    %cst_17 = arith.constant 9.99999997E-7 : f32
    %34 = vector.broadcast %cst_17 : f32 to vector<8x1xf32>
    %35 = arith.addf %31, %34 : vector<8x1xf32>
    %36 = math.rsqrt %35 : vector<8x1xf32>
    %37 = vector.broadcast %36 : vector<8x1xf32> to vector<8x32xf32>
    %38 = arith.mulf %33, %37 : vector<8x32xf32>
    %39 = vector.broadcast %13 : vector<1x32xf32> to vector<8x32xf32>
    %40 = arith.mulf %38, %39 : vector<8x32xf32>
    %41 = vector.broadcast %14 : vector<1x32xf32> to vector<8x32xf32>
    %42 = arith.addf %40, %41 : vector<8x32xf32>
    %cst_18 = arith.constant dense<0.000000e+00> : vector<8x96xf32>
    %43 = tpu.matmul %42, %10, %cst_18 {dimension_numbers = #tpu.dot_dimension_numbers<[1], [0], [0], [1], [0, 0, 1, 1], [], []>} : vector<8x32xf32>, vector<32x96xf32>, vector<8x96xf32> -> vector<8x96xf32>
    %44 = vector.broadcast %15 : vector<1x96xf32> to vector<8x96xf32>
    %45 = arith.addf %43, %44 : vector<8x96xf32>
    %46 = vector.extract_strided_slice %45 {offsets = [0, 0], sizes = [8, 8], strides = [1, 1]} : vector<8x96xf32> to vector<8x8xf32>
    %47 = vector.extract_strided_slice %45 {offsets = [0, 32], sizes = [8, 8], strides = [1, 1]} : vector<8x96xf32> to vector<8x8xf32>
    %48 = vector.extract_strided_slice %45 {offsets = [0, 64], sizes = [8, 8], strides = [1, 1]} : vector<8x96xf32> to vector<8x8xf32>
    %cst_19 = arith.constant dense<0.000000e+00> : vector<8x8xf32>
    %49 = tpu.matmul %46, %47, %cst_19 {dimension_numbers = #tpu.dot_dimension_numbers<[1], [1], [0], [0], [0, 0, 1, 0], [], []>} : vector<8x8xf32>, vector<8x8xf32>, vector<8x8xf32> -> vector<8x8xf32>
    %50 = vector.broadcast %3 : vector<1x8xf32> to vector<8x8xf32>
    %51 = arith.addf %49, %50 : vector<8x8xf32>
    %cst_20 = arith.constant dense<0xFF800000> : vector<8xf32>
    %52 = vector.multi_reduction <maximumf>, %51, %cst_20 [1] : vector<8x8xf32> to vector<8xf32>
    %53 = vector.shape_cast %52 : vector<8xf32> to vector<8x1xf32>
    %54 = vector.broadcast %53 : vector<8x1xf32> to vector<8x8xf32>
    %55 = arith.subf %51, %54 : vector<8x8xf32>
    %56 = math.exp %55 : vector<8x8xf32>
    %cst_21 = arith.constant dense<0.000000e+00> : vector<8xf32>
    %57 = vector.multi_reduction <add>, %56, %cst_21 [1] : vector<8x8xf32> to vector<8xf32>
    %58 = vector.shape_cast %57 : vector<8xf32> to vector<8x1xf32>
    %59 = tpu.reciprocal %58 {approx = true} : vector<8x1xf32> -> vector<8x1xf32>
    %60 = vector.broadcast %59 : vector<8x1xf32> to vector<8x8xf32>
    %61 = arith.mulf %56, %60 : vector<8x8xf32>
    %cst_22 = arith.constant dense<0.000000e+00> : vector<8x8xf32>
    %62 = tpu.matmul %61, %48, %cst_22 {dimension_numbers = #tpu.dot_dimension_numbers<[1], [0], [0], [1], [0, 0, 1, 1], [], []>} : vector<8x8xf32>, vector<8x8xf32>, vector<8x8xf32> -> vector<8x8xf32>
    %63 = vector.extract_strided_slice %45 {offsets = [0, 8], sizes = [8, 8], strides = [1, 1]} : vector<8x96xf32> to vector<8x8xf32>
    %64 = vector.extract_strided_slice %45 {offsets = [0, 40], sizes = [8, 8], strides = [1, 1]} : vector<8x96xf32> to vector<8x8xf32>
    %65 = vector.extract_strided_slice %45 {offsets = [0, 72], sizes = [8, 8], strides = [1, 1]} : vector<8x96xf32> to vector<8x8xf32>
    %cst_23 = arith.constant dense<0.000000e+00> : vector<8x8xf32>
    %66 = tpu.matmul %63, %64, %cst_23 {dimension_numbers = #tpu.dot_dimension_numbers<[1], [1], [0], [0], [0, 0, 1, 0], [], []>} : vector<8x8xf32>, vector<8x8xf32>, vector<8x8xf32> -> vector<8x8xf32>
    %67 = vector.broadcast %3 : vector<1x8xf32> to vector<8x8xf32>
    %68 = arith.addf %66, %67 : vector<8x8xf32>
    %cst_24 = arith.constant dense<0xFF800000> : vector<8xf32>
    %69 = vector.multi_reduction <maximumf>, %68, %cst_24 [1] : vector<8x8xf32> to vector<8xf32>
    %70 = vector.shape_cast %69 : vector<8xf32> to vector<8x1xf32>
    %71 = vector.broadcast %70 : vector<8x1xf32> to vector<8x8xf32>
    %72 = arith.subf %68, %71 : vector<8x8xf32>
    %73 = math.exp %72 : vector<8x8xf32>
    %cst_25 = arith.constant dense<0.000000e+00> : vector<8xf32>
    %74 = vector.multi_reduction <add>, %73, %cst_25 [1] : vector<8x8xf32> to vector<8xf32>
    %75 = vector.shape_cast %74 : vector<8xf32> to vector<8x1xf32>
    %76 = tpu.reciprocal %75 {approx = true} : vector<8x1xf32> -> vector<8x1xf32>
    %77 = vector.broadcast %76 : vector<8x1xf32> to vector<8x8xf32>
    %78 = arith.mulf %73, %77 : vector<8x8xf32>
    %cst_26 = arith.constant dense<0.000000e+00> : vector<8x8xf32>
    %79 = tpu.matmul %78, %65, %cst_26 {dimension_numbers = #tpu.dot_dimension_numbers<[1], [0], [0], [1], [0, 0, 1, 1], [], []>} : vector<8x8xf32>, vector<8x8xf32>, vector<8x8xf32> -> vector<8x8xf32>
    %80 = vector.extract_strided_slice %45 {offsets = [0, 16], sizes = [8, 8], strides = [1, 1]} : vector<8x96xf32> to vector<8x8xf32>
    %81 = vector.extract_strided_slice %45 {offsets = [0, 48], sizes = [8, 8], strides = [1, 1]} : vector<8x96xf32> to vector<8x8xf32>
    %82 = vector.extract_strided_slice %45 {offsets = [0, 80], sizes = [8, 8], strides = [1, 1]} : vector<8x96xf32> to vector<8x8xf32>
    %cst_27 = arith.constant dense<0.000000e+00> : vector<8x8xf32>
    %83 = tpu.matmul %80, %81, %cst_27 {dimension_numbers = #tpu.dot_dimension_numbers<[1], [1], [0], [0], [0, 0, 1, 0], [], []>} : vector<8x8xf32>, vector<8x8xf32>, vector<8x8xf32> -> vector<8x8xf32>
    %84 = vector.broadcast %3 : vector<1x8xf32> to vector<8x8xf32>
    %85 = arith.addf %83, %84 : vector<8x8xf32>
    %cst_28 = arith.constant dense<0xFF800000> : vector<8xf32>
    %86 = vector.multi_reduction <maximumf>, %85, %cst_28 [1] : vector<8x8xf32> to vector<8xf32>
    %87 = vector.shape_cast %86 : vector<8xf32> to vector<8x1xf32>
    %88 = vector.broadcast %87 : vector<8x1xf32> to vector<8x8xf32>
    %89 = arith.subf %85, %88 : vector<8x8xf32>
    %90 = math.exp %89 : vector<8x8xf32>
    %cst_29 = arith.constant dense<0.000000e+00> : vector<8xf32>
    %91 = vector.multi_reduction <add>, %90, %cst_29 [1] : vector<8x8xf32> to vector<8xf32>
    %92 = vector.shape_cast %91 : vector<8xf32> to vector<8x1xf32>
    %93 = tpu.reciprocal %92 {approx = true} : vector<8x1xf32> -> vector<8x1xf32>
    %94 = vector.broadcast %93 : vector<8x1xf32> to vector<8x8xf32>
    %95 = arith.mulf %90, %94 : vector<8x8xf32>
    %cst_30 = arith.constant dense<0.000000e+00> : vector<8x8xf32>
    %96 = tpu.matmul %95, %82, %cst_30 {dimension_numbers = #tpu.dot_dimension_numbers<[1], [0], [0], [1], [0, 0, 1, 1], [], []>} : vector<8x8xf32>, vector<8x8xf32>, vector<8x8xf32> -> vector<8x8xf32>
    %97 = vector.extract_strided_slice %45 {offsets = [0, 24], sizes = [8, 8], strides = [1, 1]} : vector<8x96xf32> to vector<8x8xf32>
    %98 = vector.extract_strided_slice %45 {offsets = [0, 56], sizes = [8, 8], strides = [1, 1]} : vector<8x96xf32> to vector<8x8xf32>
    %99 = vector.extract_strided_slice %45 {offsets = [0, 88], sizes = [8, 8], strides = [1, 1]} : vector<8x96xf32> to vector<8x8xf32>
    %cst_31 = arith.constant dense<0.000000e+00> : vector<8x8xf32>
    %100 = tpu.matmul %97, %98, %cst_31 {dimension_numbers = #tpu.dot_dimension_numbers<[1], [1], [0], [0], [0, 0, 1, 0], [], []>} : vector<8x8xf32>, vector<8x8xf32>, vector<8x8xf32> -> vector<8x8xf32>
    %101 = vector.broadcast %3 : vector<1x8xf32> to vector<8x8xf32>
    %102 = arith.addf %100, %101 : vector<8x8xf32>
    %cst_32 = arith.constant dense<0xFF800000> : vector<8xf32>
    %103 = vector.multi_reduction <maximumf>, %102, %cst_32 [1] : vector<8x8xf32> to vector<8xf32>
    %104 = vector.shape_cast %103 : vector<8xf32> to vector<8x1xf32>
    %105 = vector.broadcast %104 : vector<8x1xf32> to vector<8x8xf32>
    %106 = arith.subf %102, %105 : vector<8x8xf32>
    %107 = math.exp %106 : vector<8x8xf32>
    %cst_33 = arith.constant dense<0.000000e+00> : vector<8xf32>
    %108 = vector.multi_reduction <add>, %107, %cst_33 [1] : vector<8x8xf32> to vector<8xf32>
    %109 = vector.shape_cast %108 : vector<8xf32> to vector<8x1xf32>
    %110 = tpu.reciprocal %109 {approx = true} : vector<8x1xf32> -> vector<8x1xf32>
    %111 = vector.broadcast %110 : vector<8x1xf32> to vector<8x8xf32>
    %112 = arith.mulf %107, %111 : vector<8x8xf32>
    %cst_34 = arith.constant dense<0.000000e+00> : vector<8x8xf32>
    %113 = tpu.matmul %112, %99, %cst_34 {dimension_numbers = #tpu.dot_dimension_numbers<[1], [0], [0], [1], [0, 0, 1, 1], [], []>} : vector<8x8xf32>, vector<8x8xf32>, vector<8x8xf32> -> vector<8x8xf32>
    %114 = tpu.concatenate %62, %79, %96, %113 in 1 : vector<8x8xf32>, vector<8x8xf32>, vector<8x8xf32>, vector<8x8xf32> -> vector<8x32xf32>
    %cst_35 = arith.constant dense<0.000000e+00> : vector<8x32xf32>
    %115 = tpu.matmul %114, %11, %cst_35 {dimension_numbers = #tpu.dot_dimension_numbers<[1], [0], [0], [1], [0, 0, 1, 1], [], []>} : vector<8x32xf32>, vector<32x32xf32>, vector<8x32xf32> -> vector<8x32xf32>
    %116 = vector.broadcast %16 : vector<1x32xf32> to vector<8x32xf32>
    %117 = arith.addf %115, %116 : vector<8x32xf32>
    %118 = arith.addf %117, %1 : vector<8x32xf32>
    %cst_36 = arith.constant dense<0.000000e+00> : vector<8xf32>
    %119 = vector.multi_reduction <add>, %118, %cst_36 [1] : vector<8x32xf32> to vector<8xf32>
    %120 = vector.shape_cast %119 : vector<8xf32> to vector<8x1xf32>
    %cst_37 = arith.constant 3.200000e+01 : f32
    %121 = vector.broadcast %cst_37 : f32 to vector<8x1xf32>
    %122 = arith.divf %120, %121 : vector<8x1xf32>
    %123 = vector.broadcast %122 : vector<8x1xf32> to vector<8x32xf32>
    %124 = arith.subf %118, %123 : vector<8x32xf32>
    %125 = arith.mulf %124, %124 : vector<8x32xf32>
    %cst_38 = arith.constant dense<0.000000e+00> : vector<8xf32>
    %126 = vector.multi_reduction <add>, %125, %cst_38 [1] : vector<8x32xf32> to vector<8xf32>
    %127 = vector.shape_cast %126 : vector<8xf32> to vector<8x1xf32>
    %cst_39 = arith.constant 3.200000e+01 : f32
    %128 = vector.broadcast %cst_39 : f32 to vector<8x1xf32>
    %129 = arith.divf %127, %128 : vector<8x1xf32>
    %130 = vector.broadcast %122 : vector<8x1xf32> to vector<8x32xf32>
    %131 = arith.subf %118, %130 : vector<8x32xf32>
    %cst_40 = arith.constant 9.99999997E-7 : f32
    %132 = vector.broadcast %cst_40 : f32 to vector<8x1xf32>
    %133 = arith.addf %129, %132 : vector<8x1xf32>
    %134 = math.rsqrt %133 : vector<8x1xf32>
    %135 = vector.broadcast %134 : vector<8x1xf32> to vector<8x32xf32>
    %136 = arith.mulf %131, %135 : vector<8x32xf32>
    %137 = vector.broadcast %17 : vector<1x32xf32> to vector<8x32xf32>
    %138 = arith.mulf %136, %137 : vector<8x32xf32>
    %139 = vector.broadcast %18 : vector<1x32xf32> to vector<8x32xf32>
    %140 = arith.addf %138, %139 : vector<8x32xf32>
    %cst_41 = arith.constant dense<0.000000e+00> : vector<8x64xf32>
    %141 = tpu.matmul %140, %12, %cst_41 {dimension_numbers = #tpu.dot_dimension_numbers<[1], [0], [0], [1], [0, 0, 1, 1], [], []>} : vector<8x32xf32>, vector<32x64xf32>, vector<8x64xf32> -> vector<8x64xf32>
    %142 = vector.broadcast %19 : vector<1x64xf32> to vector<8x64xf32>
    %143 = arith.addf %141, %142 : vector<8x64xf32>
    %cst_42 = arith.constant 0.000000e+00 : f32
    %144 = vector.broadcast %cst_42 : f32 to vector<8x64xf32>
    %145 = arith.maximumf %143, %144 : vector<8x64xf32>
    %cst_43 = arith.constant dense<0.000000e+00> : vector<8x32xf32>
    %146 = tpu.matmul %145, %7, %cst_43 {dimension_numbers = #tpu.dot_dimension_numbers<[1], [0], [0], [1], [0, 0, 1, 1], [], []>} : vector<8x64xf32>, vector<64x32xf32>, vector<8x32xf32> -> vector<8x32xf32>
    %147 = vector.broadcast %20 : vector<1x32xf32> to vector<8x32xf32>
    %148 = arith.addf %146, %147 : vector<8x32xf32>
    %149 = arith.addf %148, %118 : vector<8x32xf32>
    %c1 = arith.constant 1 : index
    %c0_44 = arith.constant 0 : index
    %c0_45 = arith.constant 0 : index
    %150 = vector.load %arg3[%c1, %c0_44, %c0_45] : memref<2x32x192xf32, #tpu.memory_space<vmem>>, vector<1x32x192xf32>
    %151 = vector.shape_cast %150 : vector<1x32x192xf32> to vector<32x192xf32>
    %c1_46 = arith.constant 1 : index
    %c0_47 = arith.constant 0 : index
    %c0_48 = arith.constant 0 : index
    %152 = vector.load %arg4[%c1_46, %c0_47, %c0_48] : memref<2x64x32xf32, #tpu.memory_space<vmem>>, vector<1x64x32xf32>
    %153 = vector.shape_cast %152 : vector<1x64x32xf32> to vector<64x32xf32>
    %c1_49 = arith.constant 1 : index
    %c0_50 = arith.constant 0 : index
    %c0_51 = arith.constant 0 : index
    %154 = vector.load %arg5[%c1_49, %c0_50, %c0_51] : memref<2x8x128xf32, #tpu.memory_space<vmem>>, vector<1x8x128xf32>
    %155 = vector.shape_cast %154 : vector<1x8x128xf32> to vector<8x128xf32>
    %156 = vector.extract_strided_slice %151 {offsets = [0, 0], sizes = [32, 96], strides = [1, 1]} : vector<32x192xf32> to vector<32x96xf32>
    %157 = vector.extract_strided_slice %151 {offsets = [0, 96], sizes = [32, 32], strides = [1, 1]} : vector<32x192xf32> to vector<32x32xf32>
    %158 = vector.extract_strided_slice %151 {offsets = [0, 128], sizes = [32, 64], strides = [1, 1]} : vector<32x192xf32> to vector<32x64xf32>
    %159 = vector.extract_strided_slice %155 {offsets = [0, 0], sizes = [1, 32], strides = [1, 1]} : vector<8x128xf32> to vector<1x32xf32>
    %160 = vector.extract_strided_slice %155 {offsets = [1, 0], sizes = [1, 32], strides = [1, 1]} : vector<8x128xf32> to vector<1x32xf32>
    %161 = vector.extract_strided_slice %155 {offsets = [2, 0], sizes = [1, 96], strides = [1, 1]} : vector<8x128xf32> to vector<1x96xf32>
    %162 = vector.extract_strided_slice %155 {offsets = [3, 0], sizes = [1, 32], strides = [1, 1]} : vector<8x128xf32> to vector<1x32xf32>
    %163 = vector.extract_strided_slice %155 {offsets = [4, 0], sizes = [1, 32], strides = [1, 1]} : vector<8x128xf32> to vector<1x32xf32>
    %164 = vector.extract_strided_slice %155 {offsets = [5, 0], sizes = [1, 32], strides = [1, 1]} : vector<8x128xf32> to vector<1x32xf32>
    %165 = vector.extract_strided_slice %155 {offsets = [6, 0], sizes = [1, 64], strides = [1, 1]} : vector<8x128xf32> to vector<1x64xf32>
    %166 = vector.extract_strided_slice %155 {offsets = [7, 0], sizes = [1, 32], strides = [1, 1]} : vector<8x128xf32> to vector<1x32xf32>
    %cst_52 = arith.constant dense<0.000000e+00> : vector<8xf32>
    %167 = vector.multi_reduction <add>, %149, %cst_52 [1] : vector<8x32xf32> to vector<8xf32>
    %168 = vector.shape_cast %167 : vector<8xf32> to vector<8x1xf32>
    %cst_53 = arith.constant 3.200000e+01 : f32
    %169 = vector.broadcast %cst_53 : f32 to vector<8x1xf32>
    %170 = arith.divf %168, %169 : vector<8x1xf32>
    %171 = vector.broadcast %170 : vector<8x1xf32> to vector<8x32xf32>
    %172 = arith.subf %149, %171 : vector<8x32xf32>
    %173 = arith.mulf %172, %172 : vector<8x32xf32>
    %cst_54 = arith.constant dense<0.000000e+00> : vector<8xf32>
    %174 = vector.multi_reduction <add>, %173, %cst_54 [1] : vector<8x32xf32> to vector<8xf32>
    %175 = vector.shape_cast %174 : vector<8xf32> to vector<8x1xf32>
    %cst_55 = arith.constant 3.200000e+01 : f32
    %176 = vector.broadcast %cst_55 : f32 to vector<8x1xf32>
    %177 = arith.divf %175, %176 : vector<8x1xf32>
    %178 = vector.broadcast %170 : vector<8x1xf32> to vector<8x32xf32>
    %179 = arith.subf %149, %178 : vector<8x32xf32>
    %cst_56 = arith.constant 9.99999997E-7 : f32
    %180 = vector.broadcast %cst_56 : f32 to vector<8x1xf32>
    %181 = arith.addf %177, %180 : vector<8x1xf32>
    %182 = math.rsqrt %181 : vector<8x1xf32>
    %183 = vector.broadcast %182 : vector<8x1xf32> to vector<8x32xf32>
    %184 = arith.mulf %179, %183 : vector<8x32xf32>
    %185 = vector.broadcast %159 : vector<1x32xf32> to vector<8x32xf32>
    %186 = arith.mulf %184, %185 : vector<8x32xf32>
    %187 = vector.broadcast %160 : vector<1x32xf32> to vector<8x32xf32>
    %188 = arith.addf %186, %187 : vector<8x32xf32>
    %cst_57 = arith.constant dense<0.000000e+00> : vector<8x96xf32>
    %189 = tpu.matmul %188, %156, %cst_57 {dimension_numbers = #tpu.dot_dimension_numbers<[1], [0], [0], [1], [0, 0, 1, 1], [], []>} : vector<8x32xf32>, vector<32x96xf32>, vector<8x96xf32> -> vector<8x96xf32>
    %190 = vector.broadcast %161 : vector<1x96xf32> to vector<8x96xf32>
    %191 = arith.addf %189, %190 : vector<8x96xf32>
    %192 = vector.extract_strided_slice %191 {offsets = [0, 0], sizes = [8, 8], strides = [1, 1]} : vector<8x96xf32> to vector<8x8xf32>
    %193 = vector.extract_strided_slice %191 {offsets = [0, 32], sizes = [8, 8], strides = [1, 1]} : vector<8x96xf32> to vector<8x8xf32>
    %194 = vector.extract_strided_slice %191 {offsets = [0, 64], sizes = [8, 8], strides = [1, 1]} : vector<8x96xf32> to vector<8x8xf32>
    %cst_58 = arith.constant dense<0.000000e+00> : vector<8x8xf32>
    %195 = tpu.matmul %192, %193, %cst_58 {dimension_numbers = #tpu.dot_dimension_numbers<[1], [1], [0], [0], [0, 0, 1, 0], [], []>} : vector<8x8xf32>, vector<8x8xf32>, vector<8x8xf32> -> vector<8x8xf32>
    %196 = vector.broadcast %3 : vector<1x8xf32> to vector<8x8xf32>
    %197 = arith.addf %195, %196 : vector<8x8xf32>
    %cst_59 = arith.constant dense<0xFF800000> : vector<8xf32>
    %198 = vector.multi_reduction <maximumf>, %197, %cst_59 [1] : vector<8x8xf32> to vector<8xf32>
    %199 = vector.shape_cast %198 : vector<8xf32> to vector<8x1xf32>
    %200 = vector.broadcast %199 : vector<8x1xf32> to vector<8x8xf32>
    %201 = arith.subf %197, %200 : vector<8x8xf32>
    %202 = math.exp %201 : vector<8x8xf32>
    %cst_60 = arith.constant dense<0.000000e+00> : vector<8xf32>
    %203 = vector.multi_reduction <add>, %202, %cst_60 [1] : vector<8x8xf32> to vector<8xf32>
    %204 = vector.shape_cast %203 : vector<8xf32> to vector<8x1xf32>
    %205 = tpu.reciprocal %204 {approx = true} : vector<8x1xf32> -> vector<8x1xf32>
    %206 = vector.broadcast %205 : vector<8x1xf32> to vector<8x8xf32>
    %207 = arith.mulf %202, %206 : vector<8x8xf32>
    %cst_61 = arith.constant dense<0.000000e+00> : vector<8x8xf32>
    %208 = tpu.matmul %207, %194, %cst_61 {dimension_numbers = #tpu.dot_dimension_numbers<[1], [0], [0], [1], [0, 0, 1, 1], [], []>} : vector<8x8xf32>, vector<8x8xf32>, vector<8x8xf32> -> vector<8x8xf32>
    %209 = vector.extract_strided_slice %191 {offsets = [0, 8], sizes = [8, 8], strides = [1, 1]} : vector<8x96xf32> to vector<8x8xf32>
    %210 = vector.extract_strided_slice %191 {offsets = [0, 40], sizes = [8, 8], strides = [1, 1]} : vector<8x96xf32> to vector<8x8xf32>
    %211 = vector.extract_strided_slice %191 {offsets = [0, 72], sizes = [8, 8], strides = [1, 1]} : vector<8x96xf32> to vector<8x8xf32>
    %cst_62 = arith.constant dense<0.000000e+00> : vector<8x8xf32>
    %212 = tpu.matmul %209, %210, %cst_62 {dimension_numbers = #tpu.dot_dimension_numbers<[1], [1], [0], [0], [0, 0, 1, 0], [], []>} : vector<8x8xf32>, vector<8x8xf32>, vector<8x8xf32> -> vector<8x8xf32>
    %213 = vector.broadcast %3 : vector<1x8xf32> to vector<8x8xf32>
    %214 = arith.addf %212, %213 : vector<8x8xf32>
    %cst_63 = arith.constant dense<0xFF800000> : vector<8xf32>
    %215 = vector.multi_reduction <maximumf>, %214, %cst_63 [1] : vector<8x8xf32> to vector<8xf32>
    %216 = vector.shape_cast %215 : vector<8xf32> to vector<8x1xf32>
    %217 = vector.broadcast %216 : vector<8x1xf32> to vector<8x8xf32>
    %218 = arith.subf %214, %217 : vector<8x8xf32>
    %219 = math.exp %218 : vector<8x8xf32>
    %cst_64 = arith.constant dense<0.000000e+00> : vector<8xf32>
    %220 = vector.multi_reduction <add>, %219, %cst_64 [1] : vector<8x8xf32> to vector<8xf32>
    %221 = vector.shape_cast %220 : vector<8xf32> to vector<8x1xf32>
    %222 = tpu.reciprocal %221 {approx = true} : vector<8x1xf32> -> vector<8x1xf32>
    %223 = vector.broadcast %222 : vector<8x1xf32> to vector<8x8xf32>
    %224 = arith.mulf %219, %223 : vector<8x8xf32>
    %cst_65 = arith.constant dense<0.000000e+00> : vector<8x8xf32>
    %225 = tpu.matmul %224, %211, %cst_65 {dimension_numbers = #tpu.dot_dimension_numbers<[1], [0], [0], [1], [0, 0, 1, 1], [], []>} : vector<8x8xf32>, vector<8x8xf32>, vector<8x8xf32> -> vector<8x8xf32>
    %226 = vector.extract_strided_slice %191 {offsets = [0, 16], sizes = [8, 8], strides = [1, 1]} : vector<8x96xf32> to vector<8x8xf32>
    %227 = vector.extract_strided_slice %191 {offsets = [0, 48], sizes = [8, 8], strides = [1, 1]} : vector<8x96xf32> to vector<8x8xf32>
    %228 = vector.extract_strided_slice %191 {offsets = [0, 80], sizes = [8, 8], strides = [1, 1]} : vector<8x96xf32> to vector<8x8xf32>
    %cst_66 = arith.constant dense<0.000000e+00> : vector<8x8xf32>
    %229 = tpu.matmul %226, %227, %cst_66 {dimension_numbers = #tpu.dot_dimension_numbers<[1], [1], [0], [0], [0, 0, 1, 0], [], []>} : vector<8x8xf32>, vector<8x8xf32>, vector<8x8xf32> -> vector<8x8xf32>
    %230 = vector.broadcast %3 : vector<1x8xf32> to vector<8x8xf32>
    %231 = arith.addf %229, %230 : vector<8x8xf32>
    %cst_67 = arith.constant dense<0xFF800000> : vector<8xf32>
    %232 = vector.multi_reduction <maximumf>, %231, %cst_67 [1] : vector<8x8xf32> to vector<8xf32>
    %233 = vector.shape_cast %232 : vector<8xf32> to vector<8x1xf32>
    %234 = vector.broadcast %233 : vector<8x1xf32> to vector<8x8xf32>
    %235 = arith.subf %231, %234 : vector<8x8xf32>
    %236 = math.exp %235 : vector<8x8xf32>
    %cst_68 = arith.constant dense<0.000000e+00> : vector<8xf32>
    %237 = vector.multi_reduction <add>, %236, %cst_68 [1] : vector<8x8xf32> to vector<8xf32>
    %238 = vector.shape_cast %237 : vector<8xf32> to vector<8x1xf32>
    %239 = tpu.reciprocal %238 {approx = true} : vector<8x1xf32> -> vector<8x1xf32>
    %240 = vector.broadcast %239 : vector<8x1xf32> to vector<8x8xf32>
    %241 = arith.mulf %236, %240 : vector<8x8xf32>
    %cst_69 = arith.constant dense<0.000000e+00> : vector<8x8xf32>
    %242 = tpu.matmul %241, %228, %cst_69 {dimension_numbers = #tpu.dot_dimension_numbers<[1], [0], [0], [1], [0, 0, 1, 1], [], []>} : vector<8x8xf32>, vector<8x8xf32>, vector<8x8xf32> -> vector<8x8xf32>
    %243 = vector.extract_strided_slice %191 {offsets = [0, 24], sizes = [8, 8], strides = [1, 1]} : vector<8x96xf32> to vector<8x8xf32>
    %244 = vector.extract_strided_slice %191 {offsets = [0, 56], sizes = [8, 8], strides = [1, 1]} : vector<8x96xf32> to vector<8x8xf32>
    %245 = vector.extract_strided_slice %191 {offsets = [0, 88], sizes = [8, 8], strides = [1, 1]} : vector<8x96xf32> to vector<8x8xf32>
    %cst_70 = arith.constant dense<0.000000e+00> : vector<8x8xf32>
    %246 = tpu.matmul %243, %244, %cst_70 {dimension_numbers = #tpu.dot_dimension_numbers<[1], [1], [0], [0], [0, 0, 1, 0], [], []>} : vector<8x8xf32>, vector<8x8xf32>, vector<8x8xf32> -> vector<8x8xf32>
    %247 = vector.broadcast %3 : vector<1x8xf32> to vector<8x8xf32>
    %248 = arith.addf %246, %247 : vector<8x8xf32>
    %cst_71 = arith.constant dense<0xFF800000> : vector<8xf32>
    %249 = vector.multi_reduction <maximumf>, %248, %cst_71 [1] : vector<8x8xf32> to vector<8xf32>
    %250 = vector.shape_cast %249 : vector<8xf32> to vector<8x1xf32>
    %251 = vector.broadcast %250 : vector<8x1xf32> to vector<8x8xf32>
    %252 = arith.subf %248, %251 : vector<8x8xf32>
    %253 = math.exp %252 : vector<8x8xf32>
    %cst_72 = arith.constant dense<0.000000e+00> : vector<8xf32>
    %254 = vector.multi_reduction <add>, %253, %cst_72 [1] : vector<8x8xf32> to vector<8xf32>
    %255 = vector.shape_cast %254 : vector<8xf32> to vector<8x1xf32>
    %256 = tpu.reciprocal %255 {approx = true} : vector<8x1xf32> -> vector<8x1xf32>
    %257 = vector.broadcast %256 : vector<8x1xf32> to vector<8x8xf32>
    %258 = arith.mulf %253, %257 : vector<8x8xf32>
    %cst_73 = arith.constant dense<0.000000e+00> : vector<8x8xf32>
    %259 = tpu.matmul %258, %245, %cst_73 {dimension_numbers = #tpu.dot_dimension_numbers<[1], [0], [0], [1], [0, 0, 1, 1], [], []>} : vector<8x8xf32>, vector<8x8xf32>, vector<8x8xf32> -> vector<8x8xf32>
    %260 = tpu.concatenate %208, %225, %242, %259 in 1 : vector<8x8xf32>, vector<8x8xf32>, vector<8x8xf32>, vector<8x8xf32> -> vector<8x32xf32>
    %cst_74 = arith.constant dense<0.000000e+00> : vector<8x32xf32>
    %261 = tpu.matmul %260, %157, %cst_74 {dimension_numbers = #tpu.dot_dimension_numbers<[1], [0], [0], [1], [0, 0, 1, 1], [], []>} : vector<8x32xf32>, vector<32x32xf32>, vector<8x32xf32> -> vector<8x32xf32>
    %262 = vector.broadcast %162 : vector<1x32xf32> to vector<8x32xf32>
    %263 = arith.addf %261, %262 : vector<8x32xf32>
    %264 = arith.addf %263, %149 : vector<8x32xf32>
    %cst_75 = arith.constant dense<0.000000e+00> : vector<8xf32>
    %265 = vector.multi_reduction <add>, %264, %cst_75 [1] : vector<8x32xf32> to vector<8xf32>
    %266 = vector.shape_cast %265 : vector<8xf32> to vector<8x1xf32>
    %cst_76 = arith.constant 3.200000e+01 : f32
    %267 = vector.broadcast %cst_76 : f32 to vector<8x1xf32>
    %268 = arith.divf %266, %267 : vector<8x1xf32>
    %269 = vector.broadcast %268 : vector<8x1xf32> to vector<8x32xf32>
    %270 = arith.subf %264, %269 : vector<8x32xf32>
    %271 = arith.mulf %270, %270 : vector<8x32xf32>
    %cst_77 = arith.constant dense<0.000000e+00> : vector<8xf32>
    %272 = vector.multi_reduction <add>, %271, %cst_77 [1] : vector<8x32xf32> to vector<8xf32>
    %273 = vector.shape_cast %272 : vector<8xf32> to vector<8x1xf32>
    %cst_78 = arith.constant 3.200000e+01 : f32
    %274 = vector.broadcast %cst_78 : f32 to vector<8x1xf32>
    %275 = arith.divf %273, %274 : vector<8x1xf32>
    %276 = vector.broadcast %268 : vector<8x1xf32> to vector<8x32xf32>
    %277 = arith.subf %264, %276 : vector<8x32xf32>
    %cst_79 = arith.constant 9.99999997E-7 : f32
    %278 = vector.broadcast %cst_79 : f32 to vector<8x1xf32>
    %279 = arith.addf %275, %278 : vector<8x1xf32>
    %280 = math.rsqrt %279 : vector<8x1xf32>
    %281 = vector.broadcast %280 : vector<8x1xf32> to vector<8x32xf32>
    %282 = arith.mulf %277, %281 : vector<8x32xf32>
    %283 = vector.broadcast %163 : vector<1x32xf32> to vector<8x32xf32>
    %284 = arith.mulf %282, %283 : vector<8x32xf32>
    %285 = vector.broadcast %164 : vector<1x32xf32> to vector<8x32xf32>
    %286 = arith.addf %284, %285 : vector<8x32xf32>
    %cst_80 = arith.constant dense<0.000000e+00> : vector<8x64xf32>
    %287 = tpu.matmul %286, %158, %cst_80 {dimension_numbers = #tpu.dot_dimension_numbers<[1], [0], [0], [1], [0, 0, 1, 1], [], []>} : vector<8x32xf32>, vector<32x64xf32>, vector<8x64xf32> -> vector<8x64xf32>
    %288 = vector.broadcast %165 : vector<1x64xf32> to vector<8x64xf32>
    %289 = arith.addf %287, %288 : vector<8x64xf32>
    %cst_81 = arith.constant 0.000000e+00 : f32
    %290 = vector.broadcast %cst_81 : f32 to vector<8x64xf32>
    %291 = arith.maximumf %289, %290 : vector<8x64xf32>
    %cst_82 = arith.constant dense<0.000000e+00> : vector<8x32xf32>
    %292 = tpu.matmul %291, %153, %cst_82 {dimension_numbers = #tpu.dot_dimension_numbers<[1], [0], [0], [1], [0, 0, 1, 1], [], []>} : vector<8x64xf32>, vector<64x32xf32>, vector<8x32xf32> -> vector<8x32xf32>
    %293 = vector.broadcast %166 : vector<1x32xf32> to vector<8x32xf32>
    %294 = arith.addf %292, %293 : vector<8x32xf32>
    %295 = arith.addf %294, %264 : vector<8x32xf32>
    %c0_83 = arith.constant 0 : index
    %c0_84 = arith.constant 0 : index
    %296 = vector.load %arg6[%c0_83, %c0_84] : memref<2x128xf32, #tpu.memory_space<vmem>>, vector<2x128xf32>
    %297 = vector.extract_strided_slice %296 {offsets = [0, 0], sizes = [1, 32], strides = [1, 1]} : vector<2x128xf32> to vector<1x32xf32>
    %298 = vector.extract_strided_slice %296 {offsets = [1, 0], sizes = [1, 32], strides = [1, 1]} : vector<2x128xf32> to vector<1x32xf32>
    %cst_85 = arith.constant dense<0.000000e+00> : vector<8xf32>
    %299 = vector.multi_reduction <add>, %295, %cst_85 [1] : vector<8x32xf32> to vector<8xf32>
    %300 = vector.shape_cast %299 : vector<8xf32> to vector<8x1xf32>
    %cst_86 = arith.constant 3.200000e+01 : f32
    %301 = vector.broadcast %cst_86 : f32 to vector<8x1xf32>
    %302 = arith.divf %300, %301 : vector<8x1xf32>
    %303 = vector.broadcast %302 : vector<8x1xf32> to vector<8x32xf32>
    %304 = arith.subf %295, %303 : vector<8x32xf32>
    %305 = arith.mulf %304, %304 : vector<8x32xf32>
    %cst_87 = arith.constant dense<0.000000e+00> : vector<8xf32>
    %306 = vector.multi_reduction <add>, %305, %cst_87 [1] : vector<8x32xf32> to vector<8xf32>
    %307 = vector.shape_cast %306 : vector<8xf32> to vector<8x1xf32>
    %cst_88 = arith.constant 3.200000e+01 : f32
    %308 = vector.broadcast %cst_88 : f32 to vector<8x1xf32>
    %309 = arith.divf %307, %308 : vector<8x1xf32>
    %310 = vector.broadcast %302 : vector<8x1xf32> to vector<8x32xf32>
    %311 = arith.subf %295, %310 : vector<8x32xf32>
    %cst_89 = arith.constant 9.99999997E-7 : f32
    %312 = vector.broadcast %cst_89 : f32 to vector<8x1xf32>
    %313 = arith.addf %309, %312 : vector<8x1xf32>
    %314 = math.rsqrt %313 : vector<8x1xf32>
    %315 = vector.broadcast %314 : vector<8x1xf32> to vector<8x32xf32>
    %316 = arith.mulf %311, %315 : vector<8x32xf32>
    %317 = vector.broadcast %297 : vector<1x32xf32> to vector<8x32xf32>
    %318 = arith.mulf %316, %317 : vector<8x32xf32>
    %319 = vector.broadcast %298 : vector<1x32xf32> to vector<8x32xf32>
    %320 = arith.addf %318, %319 : vector<8x32xf32>
    %c0_90 = arith.constant 0 : index
    %c0_91 = arith.constant 0 : index
    %c0_92 = arith.constant 0 : index
    %321 = vector.load %arg7[%c0_90, %c0_91, %c0_92] : memref<1x8x32xf32, #tpu.memory_space<vmem>>, vector<1x8x32xf32>
    %322 = vector.shape_cast %321 : vector<1x8x32xf32> to vector<8x32xf32>
    %323 = vector.shape_cast %320 : vector<8x32xf32> to vector<1x8x32xf32>
    tpu.vector_store %arg7[%c0_90, %c0_91, %c0_92], %323 {strides = array<i32>} : memref<1x8x32xf32, #tpu.memory_space<vmem>>, vector<1x8x32xf32>,
    return
  }
  func.func @transform_0(%arg0: i32) -> (i32, i32, i32) {
    %c0_i32 = arith.constant 0 : i32
    %c0_i32_0 = arith.constant 0 : i32
    %c0_i32_1 = arith.constant 0 : i32
    return %arg0, %c0_i32, %c0_i32_0 : i32, i32, i32
  }
  func.func @transform_1(%arg0: i32) -> (i32, i32, i32) {
    %c0_i32 = arith.constant 0 : i32
    %c0_i32_0 = arith.constant 0 : i32
    %c0_i32_1 = arith.constant 0 : i32
    return %arg0, %c0_i32, %c0_i32_0 : i32, i32, i32
  }
  func.func @transform_2(%arg0: i32) -> (i32, i32, i32) {
    %c0_i32 = arith.constant 0 : i32
    %c0_i32_0 = arith.constant 0 : i32
    %c0_i32_1 = arith.constant 0 : i32
    %c0_i32_2 = arith.constant 0 : i32
    return %c0_i32, %c0_i32_0, %c0_i32_1 : i32, i32, i32
  }
  func.func @transform_3(%arg0: i32) -> (i32, i32, i32) {
    %c0_i32 = arith.constant 0 : i32
    %c0_i32_0 = arith.constant 0 : i32
    %c0_i32_1 = arith.constant 0 : i32
    %c0_i32_2 = arith.constant 0 : i32
    return %c0_i32, %c0_i32_0, %c0_i32_1 : i32, i32, i32
  }
  func.func @transform_4(%arg0: i32) -> (i32, i32, i32) {
    %c0_i32 = arith.constant 0 : i32
    %c0_i32_0 = arith.constant 0 : i32
    %c0_i32_1 = arith.constant 0 : i32
    %c0_i32_2 = arith.constant 0 : i32
    return %c0_i32, %c0_i32_0, %c0_i32_1 : i32, i32, i32
  }
  func.func @transform_5(%arg0: i32) -> (i32, i32) {
    %c0_i32 = arith.constant 0 : i32
    %c0_i32_0 = arith.constant 0 : i32
    %c0_i32_1 = arith.constant 0 : i32
    return %c0_i32, %c0_i32_0 : i32, i32
  }
  func.func @transform_6(%arg0: i32) -> (i32, i32, i32) {
    %c0_i32 = arith.constant 0 : i32
    %c0_i32_0 = arith.constant 0 : i32
    %c0_i32_1 = arith.constant 0 : i32
    return %arg0, %c0_i32, %c0_i32_0 : i32, i32, i32
  }
}

</mosaic_0001>

<bundles_post_ra>
// kernel: transformer_encoder_forward.1
= control target key start
LH: loop header
LB: loop body
LE: loop exit
PB: predicated region body
PF: predicated region fallthrough
CT: control target
= control target key end

     0   :  { %s2943_s21 = smov 0   ;;  %s3435_s0 = inlined_call_operand.vmem [shape: f32[2,8,32], index: 0, kind: input, shape index: {}]   ;;  %s3436_s1 = inlined_call_operand.vmem [shape: f32[2,1,8], index: 1, kind: input, shape index: {}]   ;;  %s3437_s2 = inlined_call_operand.vmem [shape: f32[2,32,192], index: 2, kind: input, shape index: {}]   ;;  %s3438_s3 = inlined_call_operand.vmem [shape: f32[2,64,32], index: 3, kind: input, shape index: {}]   ;;  %s3439_s4 = inlined_call_operand.vmem [shape: f32[2,8,128], index: 4, kind: input, shape index: {}]   ;;  %s3440_s5 = inlined_call_operand.vmem [shape: f32[2,128], index: 5, kind: input, shape index: {}]   ;;  %s3441_s6 = inlined_call_operand.vmem [shape: f32[2,8,32], index: 6, kind: output, shape index: {}]  }
   0x1 LB: > { %s2493_s22 = sadd.s32 4294967295, %s2889_s21   ;;  %p2497_p0 = scmp.ge.s32.totalorder %s2889_s21, 1  ;;  %s2889_s21 = sphi %s2943_s21, %s16_s21  }
   0x2   : > { %p219_p1 = scmp.lt.s32.totalorder %s2889_s21, 3 }
   0x4   : > { %p220_p2 = pnand %p2497_p0, %p219_p1 }
   0x5   : > { %p250_p3 = scmp.lt.s32.totalorder (!%p220_p2), %s2493_s22, 1  ;;  %s2893_s13 = smov (!%p220_p2), 120  }
   0x6   : > { %223 = sbr.rel (%p220_p2) target bundleno = 5025 (0x13a1), region = 44  ;;  %s2894_s14 = smov (!%p220_p2), 96  }
   0x7   : > { %s2895_s15 = smov (!%p220_p2), 88   ;;  %s2896_s16 = smov (!%p220_p2), 80  }
   0x8   : > { %s2897_s17 = smov (!%p220_p2), 112   ;;  %s2898_s18 = smov (!%p220_p2), 72  }
   0x9   : > { %s2899_s19 = smov (!%p220_p2), 104   ;;  %s2901_s27 = smov (!%p220_p2), 48  }
   0xa   : > { %s2902_s28 = smov (!%p220_p2), 40   ;;  %s2903_s29 = smov (!%p220_p2), 56  }
   0xb   : > { %s3447_s22 = smov (!%p250_p3, %s2493_s22), 1  ;;  %vm280_vm0 = vcmask 261120   ;;  %v2968_v7 = vld [vmem:[%s3437_s2 + $0x30] sm:$0xff]  ;;  %v2891_v8 = vmov 0.0   ;;  %v2974_v9 = vld [vmem:[%s3437_s2 + $0x20] sm:$0xff]  ;;  %vm2892_vm1 = vmmov 0   ;;  %v295_v15 = vlaneseq }
   0xc   : > { %s3442_s23 = sshll.u32 %s3447_s22, 3  ;;  %2632 = vmatprep.subr.mxu1 %v2891_v8  ;;  %2640 = vmatprep.mubr.msk.f32.mxu1 %vm2892_vm1, %v2891_v8  ;;  %v2984_v10 = vld [vmem:[%s3437_s2 + $0x10] sm:$0xff]  ;;  %v2993_v11 = vld [vmem:[%s3437_s2] sm:$0xff]  ;;  %vm391_vm2 = vcmask 64512   ;;  %s256_s25 = scalar_lea.vmem %s3436_s1, %s3447_s22  ;;  %vm1061_vm3 = vcmask 130048   ;;  %vm1063_vm4 = vcmask 195584  }
   0xd   : > { %s253_s26 = scalar_lea.vmem %s3435_s0, %s3442_s23  ;;  %2633 = vmatpush3.msra.mxu1 %v2968_v7  ;;  %2653 = vmatprep.subr.mxu0 %v2891_v8  ;;  %v2999_v16 = vshrl.u32 %v295_v15, 7  ;;  %v3007_v18 = vld [vmem:[%s3439_s4] sm:$0xff]  ;;  %s2904_s30 = smov 32   ;;  %vm1264_vm5 = vcmask 523264  }
   0xe   : > { %v2959_v0 = vld [vmem:[%s253_s26] sm:$0xff]  ;;  %2634 = vmatprep.subr.mxu1 %v2891_v8  ;;  %2655 = vmatprep.mubr.msk.f32.mxu0 %vm2892_vm1, %v2891_v8  ;;  %s2900_s26 = smov 64   ;;  %s2905_s7 = smov 8  }
   0xf   : > { %v281_v1 = vsel %vm280_vm0, %v2959_v0, 0.0  ;;  %2635 = vmatpush3.msra.mxu1 %v2974_v9  ;;  %v3002_v17 = vsub.s32 0, %v2999_v16  ;;  %v3010_v19 = vsub.s32 1, %v2999_v16  ;;  %v307_v26 = vsub.s32 2, %v2999_v16  ;;  %v3064_v38 = vld [vmem:[%s256_s25] ss:$0 sm:$0xff] }
  0x10   : > { %282 = vadd.xlane.f32.xlu0 %v281_v1  ;;  %2636 = vmatprep.subr.mxu1 %v2891_v8  ;;  %s2906_s8 = smov 16   ;;  %s3443_s9 = smov 24  }
  0x11   : > { %2637 = vmatpush3.msra.mxu1 %v2984_v10  ;;  %v298_v20 = vrot.slane %v3007_v18, %v3002_v17  ;;  %v303_v23 = vrot.slane %v3007_v18, %v3010_v19  ;;  %v308_v27 = vrot.slane %v3007_v18, %v307_v26 }
  0x12   : > { %2638 = vmatprep.subr.mxu1 %v2891_v8 }
  0x13   : > { %2639 = vmatpush3.msra.mxu1 %v2993_v11 }
  0x14   : > { %2643 = vmatprep.subr.mxu1 %v2891_v8 }
  0x99   : > { %v283_v2 = vpop.xlane.xlu0 %282 }
  0x9a   : > { %v285_v3 = vmul.f32 0.03125, %v283_v2 }
  0x9c   : > { %v286_v4 = vsub.f32 %v2959_v0, %v285_v3 }
  0x9e   : > { %v287_v5 = vmul.f32 %v286_v4, %v286_v4 }
  0xa0   : > { %v288_v6 = vsel %vm280_vm0, %v287_v5, 0.0 }
  0xa1   : > { %289 = vadd.xlane.f32.xlu0 %v288_v6 }
 0x12a   : > { %v290_v12 = vpop.xlane.xlu0 %289 }
 0x12b   : > { %v291_v13 = vmul.f32 0.03125, %v290_v12 }
 0x12d   : > { %v292_v14 = vadd.f32 1e-06, %v291_v13 }
 0x12f   : > { %2841 = vrsqrt.f32 %v292_v14 }
 0x13c   : > { %v2842_v21 = vpop.eup %2841 }
 0x13d   : > { %v294_v22 = vmul.f32 %v2842_v21, %v286_v4 }
 0x13f   : > { %v299_v24 = vmul.f32 %v298_v20, %v294_v22 }
 0x141   : > { %v304_v25 = vadd.f32 %v303_v23, %v299_v24 }
 0x143   : > { %2641 = vmatmul.mubr.msk.f32.vlgmr.msra.gmra.mxu1 %vm280_vm0, %v304_v25 }
 0x144   : > { %2645 = vmatprep.mubr.msk.f32.mxu1 %vm2892_vm1, %v2891_v8 }
 0x203   : > { %v378_v28 = vpop.f32.mrf.mxu1 }
 0x204   : > { %v3023_v29 = vadd.f32 %v378_v28, %v308_v27 }
 0x205   : > { %v2642_v30 = vpop.f32.mrf.mxu1 }
 0x206   : > { %553 = vrot.lane.b32.xlu0 %v3023_v29, %s2893_s13  ;;  %389 = vrot.lane.b32.xlu1 %v3023_v29, %s2894_s14 }
 0x20a   : > { %555 = vrot.lane.b32.xlu1 %v3023_v29, %s2895_s15 }
 0x20e   : > { %720 = vrot.lane.b32.xlu1 %v3023_v29, %s2896_s16 }
 0x212   : > { %718 = vrot.lane.b32.xlu1 %v3023_v29, %s2897_s17 }
 0x216   : > { %885 = vrot.lane.b32.xlu1 %v3023_v29, %s2898_s18 }
 0x21a   : > { %883 = vrot.lane.b32.xlu1 %v3023_v29, %s2899_s19 }
 0x278   : > { %v390_v31 = vpop.permute.xlu1 %389  ;;  %v554_v33 = vpop.permute.xlu0 %553 }
 0x279   : > { %2644 = vmatpush3.xpose.msk.msra.mxu1 %vm391_vm2, %v390_v31 }
 0x27a   : > { %2648 = vmatprep.subr.mxu1 %v2891_v8 }
 0x27c   : > { %2646 = vmatmul.mubr.msk.f32.vlgmr.msra.gmra.mxu1 %vm391_vm2, %v3023_v29  ;;  %v556_v32 = vpop.permute.xlu1 %555 }
 0x27d   : > { %2654 = vmatpush3.xpose.msk.msra.mxu0 %vm391_vm2, %v556_v32  ;;  %2650 = vmatprep.mubr.msk.f32.mxu1 %vm2892_vm1, %v2891_v8 }
 0x27e   : > { %2663 = vmatprep.subr.mxu0 %v2891_v8 }
 0x280   : > { %2656 = vmatmul.mubr.msk.f32.vlgmr.msra.gmra.mxu0 %vm391_vm2, %v554_v33  ;;  %v721_v34 = vpop.permute.xlu1 %720 }
 0x281   : > { %2664 = vmatpush3.xpose.msk.msra.mxu0 %vm391_vm2, %v721_v34  ;;  %2665 = vmatprep.mubr.msk.f32.mxu0 %vm2892_vm1, %v2891_v8 }
 0x282   : > { %2673 = vmatprep.subr.mxu0 %v2891_v8 }
 0x284   : > { %v719_v35 = vpop.permute.xlu1 %718 }
 0x285   : > { %2666 = vmatmul.mubr.msk.f32.vlgmr.msra.gmra.mxu0 %vm391_vm2, %v719_v35 }
 0x286   : > { %2675 = vmatprep.mubr.msk.f32.mxu0 %vm2892_vm1, %v2891_v8 }
 0x288   : > { %v886_v36 = vpop.permute.xlu1 %885 }
 0x289   : > { %2674 = vmatpush3.xpose.msk.msra.mxu0 %vm391_vm2, %v886_v36 }
 0x28a   : > { %2683 = vmatprep.subr.mxu0 %v2891_v8 }
 0x28c   : > { %v884_v37 = vpop.permute.xlu1 %883 }
 0x28d   : > { %2676 = vmatmul.mubr.msk.f32.vlgmr.msra.gmra.mxu0 %vm391_vm2, %v884_v37 }
 0x28e   : > { %2691 = vmatprep.mubr.msk.f32.mxu0 %vm2892_vm1, %v2891_v8 }
 0x33c   : > { %v462_v39 = vpop.f32.mrf.mxu1 }
 0x33d   : > { %v463_v40 = vadd.f32 %v3064_v38, %v462_v39 }
 0x33e   : > { %v2647_v41 = vpop.f32.mrf.mxu1 }
 0x33f   : > { %v466_v42 = vsel %vm391_vm2, %v463_v40, -inf }
 0x340   : > { %v627_v43 = vpop.f32.mrf.mxu0  ;;  %467 = vmax.xlane.f32.xlu1 %v466_v42 }
 0x341   : > { %v628_v44 = vadd.f32 %v3064_v38, %v627_v43 }
 0x342   : > { %v2657_v45 = vpop.f32.mrf.mxu0 }
 0x343   : > { %v631_v46 = vsel %vm391_vm2, %v628_v44, -inf }
 0x344   : > { %632 = vmax.xlane.f32.xlu0 %v631_v46 }
 0x345   : > { %v792_v47 = vpop.f32.mrf.mxu0 }
 0x346   : > { %v793_v48 = vadd.f32 %v3064_v38, %v792_v47 }
 0x347   : > { %v2667_v49 = vpop.f32.mrf.mxu0 }
 0x348   : > { %v796_v50 = vsel %vm391_vm2, %v793_v48, -inf }
 0x349   : > { %797 = vmax.xlane.f32.xlu1 %v796_v50 }
 0x34d   : > { %v957_v51 = vpop.f32.mrf.mxu0 }
 0x34e   : > { %v958_v52 = vadd.f32 %v3064_v38, %v957_v51 }
 0x34f   : > { %v2677_v53 = vpop.f32.mrf.mxu0 }
 0x350   : > { %v961_v54 = vsel %vm391_vm2, %v958_v52, -inf  ;;  %v1067_v53 = vsub.s32 3, %v2999_v16 }
 0x351   : > { %962 = vmax.xlane.f32.xlu0 %v961_v54 }
 0x352   : > { %v1068_v54 = vrot.slane %v3007_v18, %v1067_v53 }
 0x35a   : > { %477 = vrot.lane.b32.xlu1 %v3023_v29, %s2900_s26 }
 0x3c9   : > { %v468_v55 = vpop.xlane.xlu1 %467 }
 0x3ca   : > { %v469_v56 = vsub.f32 %v463_v40, %v468_v55 }
 0x3cc   : > { %v470_v57 = vmul.f32 1.442695, %v469_v56 }
 0x3cd   : > { %v633_v58 = vpop.xlane.xlu0 %632 }
 0x3ce   : > { %2843 = vpow2.f32 %v470_v57  ;;  %v634_v59 = vsub.f32 %v628_v44, %v633_v58 }
 0x3d0   : > { %v635_v60 = vmul.f32 1.442695, %v634_v59 }
 0x3d2   : > { %2845 = vpow2.f32 %v635_v60  ;;  %v798_v61 = vpop.xlane.xlu1 %797 }
 0x3d3   : > { %v799_v62 = vsub.f32 %v793_v48, %v798_v61 }
 0x3d5   : > { %v800_v63 = vmul.f32 1.442695, %v799_v62 }
 0x3d6   : > { %v478_v1 = vpop.permute.xlu1 %477 }
 0x3d7   : > { %2847 = vpow2.f32 %v800_v63  ;;  %2649 = vmatpush3.msra.mxu1 %v478_v1 }
 0x3d8   : > { %2658 = vmatprep.subr.mxu1 %v2891_v8 }
 0x3da   : > { %v963_v2 = vpop.xlane.xlu0 %962 }
 0x3db   : > { %v2844_v3 = vpop.eup %2843  ;;  %v964_v4 = vsub.f32 %v958_v52, %v963_v2  ;;  %v270_v2 = vld [vmem:[%s3437_s2 + $0x38] sm:$0xff] }
 0x3dc   : > { %v472_v5 = vsel %vm391_vm2, %v2844_v3, 0.0 }
 0x3dd   : > { %v965_v6 = vmul.f32 1.442695, %v964_v4  ;;  %473 = vadd.xlane.f32.xlu1 %v472_v5  ;;  %v264_v4 = vld [vmem:[%s3437_s2 + $0x8] sm:$0xff]  ;;  %v278_v5 = vld [vmem:[%s3438_s3 + $0x38] sm:$0xff] }
 0x3df   : > { %v2846_v12 = vpop.eup %2845  ;;  %2849 = vpow2.f32 %v965_v6  ;;  %v277_v6 = vld [vmem:[%s3438_s3 + $0x30] sm:$0xff] }
 0x3e0   : > { %v637_v13 = vsel %vm391_vm2, %v2846_v12, 0.0 }
 0x3e1   : > { %638 = vadd.xlane.f32.xlu0 %v637_v13  ;;  %v275_v13 = vld [vmem:[%s3438_s3 + $0x20] sm:$0xff] }
 0x3e4   : > { %v2848_v14 = vpop.eup %2847 }
 0x3e5   : > { %v802_v15 = vsel %vm391_vm2, %v2848_v14, 0.0 }
 0x3e6   : > { %803 = vadd.xlane.f32.xlu1 %v802_v15 }
 0x3ec   : > { %v2850_v20 = vpop.eup %2849 }
 0x3ed   : > { %v967_v21 = vsel %vm391_vm2, %v2850_v20, 0.0 }
 0x3ee   : > { %968 = vadd.xlane.f32.xlu0 %v967_v21 }
 0x3f7   : > { %807 = vrot.lane.b32.xlu1 %v3023_v29, %s2901_s27 }
 0x3fb   : > { %972 = vrot.lane.b32.xlu1 %v3023_v29, %s2902_s28 }
 0x3ff   : > { %1077 = vrot.lane.b32.xlu1 %v2974_v9, %s2904_s30 }
 0x403   : > { %1075 = vrot.lane.b32.xlu1 %v2984_v10, %s2904_s30 }
 0x404   : > { %642 = vrot.lane.b32.xlu0 %v3023_v29, %s2903_s29 }
 0x408   : > { %1079 = vrot.lane.b32.xlu0 %v2968_v7, %s2904_s30 }
 0x466   : > { %v474_v22 = vpop.xlane.xlu1 %473 }
 0x467   : > { %2851 = vrcp.f32 %v474_v22  ;;  %v1174_v22 = vsub.s32 4, %v2999_v16 }
 0x46a   : > { %v639_v23 = vpop.xlane.xlu0 %638 }
 0x46b   : > { %2853 = vrcp.f32 %v639_v23  ;;  %v1179_v23 = vsub.s32 5, %v2999_v16 }
 0x46f   : > { %v804_v24 = vpop.xlane.xlu1 %803 }
 0x470   : > { %2855 = vrcp.f32 %v804_v24  ;;  %v1175_v24 = vrot.slane %v3007_v18, %v1174_v22 }
 0x473   : > { %v808_v31 = vpop.permute.xlu1 %807 }
 0x474   : > { %v2852_v25 = vpop.eup %2851 }
 0x475   : > { %v476_v27 = vmul.f32 %v2852_v25, %v2844_v3  ;;  %v266_v3 = vld [vmem:[%s3437_s2 + $0x18] sm:$0xff] }
 0x477   : > { %v969_v28 = vpop.xlane.xlu0 %968  ;;  %2651 = vmatmul.mubr.msk.f32.vlgmr.msra.gmra.mxu1 %vm391_vm2, %v476_v27  ;;  %v973_v35 = vpop.permute.xlu1 %972 }
 0x478   : > { %v2854_v30 = vpop.eup %2853  ;;  %2857 = vrcp.f32 %v969_v28  ;;  %2660 = vmatprep.mubr.msk.f32.mxu1 %vm2892_vm1, %v2891_v8  ;;  %v1180_v28 = vrot.slane %v3007_v18, %v1179_v23 }
 0x479   : > { %v641_v33 = vmul.f32 %v2854_v30, %v2846_v12  ;;  %v276_v12 = vld [vmem:[%s3438_s3 + $0x28] sm:$0xff] }
 0x47b   : > { %v643_v32 = vpop.permute.xlu0 %642  ;;  %v1078_v40 = vpop.permute.xlu1 %1077 }
 0x47c   : > { %2659 = vmatpush3.msra.mxu1 %v643_v32  ;;  %v273_v32 = vld [vmem:[%s3438_s3 + $0x10] sm:$0xff] }
 0x47d   : > { %v2856_v29 = vpop.eup %2855  ;;  %2661 = vmatmul.mubr.msk.f32.vlgmr.msra.gmra.mxu1 %vm391_vm2, %v641_v33  ;;  %2668 = vmatprep.subr.mxu1 %v2891_v8  ;;  %v272_v33 = vld [vmem:[%s3438_s3 + $0x8] sm:$0xff] }
 0x47e   : > { %2669 = vmatpush3.msra.mxu1 %v808_v31  ;;  %2670 = vmatprep.mubr.msk.f32.mxu1 %vm2892_vm1, %v2891_v8  ;;  %v806_v34 = vmul.f32 %v2856_v29, %v2848_v14  ;;  %v274_v14 = vld [vmem:[%s3438_s3 + $0x18] sm:$0xff]  ;;  %v271_v29 = vld [vmem:[%s3438_s3] sm:$0xff] }
 0x47f   : > { %2678 = vmatprep.subr.mxu1 %v2891_v8  ;;  %v1080_v39 = vpop.permute.xlu0 %1079  ;;  %v1076_v41 = vpop.permute.xlu1 %1075 }
 0x480   : > { %2684 = vmatpush3.msra.mxu0 %v1080_v39 }
 0x481   : > { %2671 = vmatmul.mubr.msk.f32.vlgmr.msra.gmra.mxu1 %vm391_vm2, %v806_v34  ;;  %2685 = vmatprep.subr.mxu0 %v2891_v8  ;;  %v1184_v34 = vsub.s32 6, %v2999_v16 }
 0x482   : > { %2679 = vmatpush3.msra.mxu1 %v973_v35  ;;  %2680 = vmatprep.mubr.msk.f32.mxu1 %vm2892_vm1, %v2891_v8 }
 0x483   : > { %2694 = vmatprep.subr.mxu1 %v2891_v8  ;;  %2686 = vmatpush3.msra.mxu0 %v1078_v40  ;;  %v1185_v35 = vrot.slane %v3007_v18, %v1184_v34 }
 0x484   : > { %2687 = vmatprep.subr.mxu0 %v2891_v8 }
 0x485   : > { %v2858_v36 = vpop.eup %2857  ;;  %2688 = vmatpush3.msra.mxu0 %v1076_v41  ;;  %v1262_v41 = vsub.s32 7, %v2999_v16 }
 0x486   : > { %v971_v37 = vmul.f32 %v2858_v36, %v2850_v20  ;;  %2689 = vmatprep.subr.mxu0 %v2891_v8 }
 0x488   : > { %2681 = vmatmul.mubr.msk.f32.vlgmr.msra.gmra.mxu1 %vm391_vm2, %v971_v37 }
 0x489   : > { %2702 = vmatprep.mubr.msk.f32.mxu1 %vm2892_vm1, %v2891_v8  ;;  %2695 = vmatpush3.msra.mxu1 %v270_v2 }
 0x48a   : > { %2696 = vmatprep.subr.mxu1 %v2891_v8 }
 0x537   : > { %v549_v42 = vpop.f32.mrf.mxu1 }
 0x539   : > { %v2652_v7 = vpop.f32.mrf.mxu1 }
 0x53d   : > { %v714_v43 = vpop.f32.mrf.mxu1 }
 0x53e   : > { %1049 = vrot.lane.b32.xlu0 %v714_v43, %s2905_s7 }
 0x53f   : > { %v2662_v9 = vpop.f32.mrf.mxu1 }
 0x541   : > { %v879_v10 = vpop.f32.mrf.mxu1 }
 0x542   : > { %1053 = vrot.lane.b32.xlu0 %v879_v10, %s2906_s8 }
 0x543   : > { %v2672_v44 = vpop.f32.mrf.mxu1 }
 0x546   : > { %1073 = vrot.lane.b32.xlu0 %v2993_v11, %s2904_s30 }
 0x548   : > { %v1044_v45 = vpop.f32.mrf.mxu1 }
 0x549   : > { %1057 = vrot.lane.b32.xlu1 %v1044_v45, %s3443_s9 }
 0x54a   : > { %v2682_v46 = vpop.f32.mrf.mxu1 }
 0x5b0   : > { %v1050_v47 = vpop.permute.xlu0 %1049 }
 0x5b1   : > { %v1060_v50 = vsel %vm391_vm2, %v549_v42, %v1050_v47  ;;  %v1263_v42 = vrot.slane %v3007_v18, %v1262_v41  ;;  %v3214_v18 = vld [vmem:[%s3437_s2 + $0x70] sm:$0xff] }
 0x5b4   : > { %v1054_v48 = vpop.permute.xlu0 %1053 }
 0x5b5   : > { %v1062_v51 = vsel %vm1061_vm3, %v1060_v50, %v1054_v48  ;;  %v3220_v50 = vld [vmem:[%s3437_s2 + $0x60] sm:$0xff] }
 0x5b8   : > { %v1074_v49 = vpop.permute.xlu0 %1073 }
 0x5b9   : > { %2690 = vmatpush3.msra.mxu0 %v1074_v49 }
 0x5ba   : > { %2705 = vmatprep.subr.mxu0 %v2891_v8 }
 0x5bb   : > { %v1058_v52 = vpop.permute.xlu1 %1057 }
 0x5bc   : > { %v1064_v11 = vsel %vm1063_vm4, %v1062_v51, %v1058_v52  ;;  %v3226_v51 = vld [vmem:[%s3437_s2 + $0x50] sm:$0xff]  ;;  %v3233_v52 = vld [vmem:[%s3437_s2 + $0x40] sm:$0xff] }
 0x5bd   : > { %2692 = vmatmul.mubr.msk.f32.vlgmr.msra.gmra.mxu0 %vm280_vm0, %v1064_v11 }
 0x5be   : > { %2721 = vmatprep.mubr.msk.f32.mxu0 %vm2892_vm1, %v2891_v8  ;;  %2706 = vmatpush3.msra.mxu0 %v278_v5 }
 0x5bf   : > { %2707 = vmatprep.subr.mxu0 %v2891_v8 }
 0x5c0   : > { %2708 = vmatpush3.msra.mxu0 %v277_v6 }
 0x5c1   : > { %2709 = vmatprep.subr.mxu0 %v2891_v8 }
 0x5c2   : > { %2710 = vmatpush3.msra.mxu0 %v276_v12 }
 0x5c3   : > { %2711 = vmatprep.subr.mxu0 %v2891_v8 }
 0x5c4   : > { %2712 = vmatpush3.msra.mxu0 %v275_v13 }
 0x5c5   : > { %2713 = vmatprep.subr.mxu0 %v2891_v8 }
 0x5c6   : > { %2714 = vmatpush3.msra.mxu0 %v274_v14 }
 0x5c7   : > { %2715 = vmatprep.subr.mxu0 %v2891_v8 }
 0x5c8   : > { %2716 = vmatpush3.msra.mxu0 %v273_v32 }
 0x5c9   : > { %2717 = vmatprep.subr.mxu0 %v2891_v8 }
 0x5ca   : > { %2718 = vmatpush3.msra.mxu0 %v272_v33 }
 0x5cb   : > { %2719 = vmatprep.subr.mxu0 %v2891_v8 }
 0x5cc   : > { %2720 = vmatpush3.msra.mxu0 %v271_v29 }
 0x5cd   : > { %2745 = vmatprep.subr.mxu0 %v2891_v8 }
 0x67d   : > { %v1154_v55 = vpop.f32.mrf.mxu0 }
 0x67e   : > { %v1155_v56 = vadd.f32 %v1154_v55, %v1068_v54 }
 0x67f   : > { %v2693_v57 = vpop.f32.mrf.mxu0 }
 0x680   : > { %v3128_v58 = vadd.f32 %v1155_v56, %v2959_v0  ;;  %v268_v0 = vld [vmem:[%s3437_s2 + $0x28] sm:$0xff] }
 0x681   : > { %2697 = vmatpush3.msra.mxu1 %v268_v0  ;;  %v3242_v56 = vld [vmem:[%s3439_s4 + $0x8] sm:$0xff] }
 0x682   : > { %v1159_v59 = vsel %vm280_vm0, %v3128_v58, 0.0  ;;  %2698 = vmatprep.subr.mxu1 %v2891_v8  ;;  %v1375_v57 = vrot.slane %v3242_v56, %v3002_v17 }
 0x683   : > { %1160 = vadd.xlane.f32.xlu1 %v1159_v59  ;;  %2699 = vmatpush3.msra.mxu1 %v266_v3 }
 0x684   : > { %2700 = vmatprep.subr.mxu1 %v2891_v8 }
 0x685   : > { %2701 = vmatpush3.msra.mxu1 %v264_v4 }
 0x686   : > { %2724 = vmatprep.subr.mxu1 %v2891_v8 }
 0x70c   : > { %v1161_v60 = vpop.xlane.xlu1 %1160 }
 0x70d   : > { %v1162_v61 = vmul.f32 0.03125, %v1161_v60  ;;  %v1380_v60 = vrot.slane %v3242_v56, %v3010_v19 }
 0x70f   : > { %v1163_v62 = vsub.f32 %v3128_v58, %v1162_v61 }
 0x711   : > { %v1164_v63 = vmul.f32 %v1163_v62, %v1163_v62 }
 0x713   : > { %v1165_v1 = vsel %vm280_vm0, %v1164_v63, 0.0  ;;  %v1385_v63 = vrot.slane %v3242_v56, %v307_v26 }
 0x714   : > { %1166 = vadd.xlane.f32.xlu0 %v1165_v1 }
 0x79d   : > { %v1167_v15 = vpop.xlane.xlu0 %1166 }
 0x79e   : > { %v1168_v20 = vmul.f32 0.03125, %v1167_v15 }
 0x7a0   : > { %v1169_v21 = vadd.f32 1e-06, %v1168_v20 }
 0x7a2   : > { %2859 = vrsqrt.f32 %v1169_v21 }
 0x7af   : > { %v2860_v25 = vpop.eup %2859 }
 0x7b0   : > { %v1171_v27 = vmul.f32 %v2860_v25, %v1163_v62 }
 0x7b2   : > { %v1176_v30 = vmul.f32 %v1175_v24, %v1171_v27 }
 0x7b4   : > { %v1181_v31 = vadd.f32 %v1180_v28, %v1176_v30 }
 0x7b6   : > { %2703 = vmatmul.mubr.msk.f32.vlgmr.msra.gmra.mxu1 %vm280_vm0, %v1181_v31 }
 0x7b7   : > { %2732 = vmatprep.mubr.msk.f32.mxu1 %vm2892_vm1, %v2891_v8  ;;  %2725 = vmatpush3.msra.mxu1 %v3214_v18 }
 0x7b8   : > { %2726 = vmatprep.subr.mxu1 %v2891_v8 }
 0x7b9   : > { %2727 = vmatpush3.msra.mxu1 %v3220_v50 }
 0x7ba   : > { %2728 = vmatprep.subr.mxu1 %v2891_v8 }
 0x7bb   : > { %2729 = vmatpush3.msra.mxu1 %v3226_v51 }
 0x7bc   : > { %2730 = vmatprep.subr.mxu1 %v2891_v8 }
 0x7bd   : > { %2731 = vmatpush3.msra.mxu1 %v3233_v52 }
 0x7be   : > { %2735 = vmatprep.subr.mxu1 %v2891_v8 }
 0x876   : > { %v1255_v36 = vpop.f32.mrf.mxu1 }
 0x877   : > { %v1256_v37 = vadd.f32 %v1255_v36, %v1185_v35 }
 0x878   : > { %v2704_v39 = vpop.f32.mrf.mxu1 }
 0x879   : > { %v1259_v40 = vmax.f32 %v1256_v37, 0.0 }
 0x87b   : > { %2722 = vmatmul.mubr.msk.f32.vlgmr.msra.gmra.mxu0 %vm1264_vm5, %v1259_v40 }
 0x87c   : > { %2747 = vmatprep.mubr.msk.f32.mxu0 %vm2892_vm1, %v2891_v8 }
 0x93b   : > { %v1334_v7 = vpop.f32.mrf.mxu0 }
 0x93c   : > { %v1335_v43 = vadd.f32 %v1334_v7, %v1263_v42 }
 0x93d   : > { %v2723_v9 = vpop.f32.mrf.mxu0 }
 0x93e   : > { %v3205_v10 = vadd.f32 %v1335_v43, %v3128_v58 }
 0x940   : > { %v1359_v44 = vsel %vm280_vm0, %v3205_v10, 0.0 }
 0x941   : > { %1360 = vadd.xlane.f32.xlu0 %v1359_v44 }
 0x9ca   : > { %v1361_v45 = vpop.xlane.xlu0 %1360 }
 0x9cb   : > { %v1362_v46 = vmul.f32 0.03125, %v1361_v45 }
 0x9cd   : > { %v1363_v47 = vsub.f32 %v3205_v10, %v1362_v46 }
 0x9cf   : > { %v1364_v48 = vmul.f32 %v1363_v47, %v1363_v47 }
 0x9d1   : > { %v1365_v49 = vsel %vm280_vm0, %v1364_v48, 0.0 }
 0x9d2   : > { %1366 = vadd.xlane.f32.xlu1 %v1365_v49 }
 0xa5b   : > { %v1367_v11 = vpop.xlane.xlu1 %1366 }
 0xa5c   : > { %v1368_v54 = vmul.f32 0.03125, %v1367_v11 }
 0xa5e   : > { %v1369_v55 = vadd.f32 1e-06, %v1368_v54 }
 0xa60   : > { %2861 = vrsqrt.f32 %v1369_v55 }
 0xa6d   : > { %v2862_v58 = vpop.eup %2861 }
 0xa6e   : > { %v1371_v59 = vmul.f32 %v2862_v58, %v1363_v47 }
 0xa70   : > { %v1376_v61 = vmul.f32 %v1375_v57, %v1371_v59 }
 0xa72   : > { %v1381_v62 = vadd.f32 %v1380_v60, %v1376_v61 }
 0xa74   : > { %2733 = vmatmul.mubr.msk.f32.vlgmr.msra.gmra.mxu1 %vm280_vm0, %v1381_v62 }
 0xa75   : > { %2737 = vmatprep.mubr.msk.f32.mxu1 %vm2892_vm1, %v2891_v8 }
 0xb34   : > { %v1455_v1 = vpop.f32.mrf.mxu1 }
 0xb35   : > { %v3254_v2 = vadd.f32 %v1455_v1, %v1385_v63 }
 0xb36   : > { %v2734_v0 = vpop.f32.mrf.mxu1 }
 0xb37   : > { %1625 = vrot.lane.b32.xlu1 %v3254_v2, %s2895_s15  ;;  %1460 = vrot.lane.b32.xlu0 %v3254_v2, %s2894_s14 }
 0xb3b   : > { %1623 = vrot.lane.b32.xlu1 %v3254_v2, %s2893_s13  ;;  %1790 = vrot.lane.b32.xlu0 %v3254_v2, %s2896_s16  ;;  %s3444_s13 = smov 24  }
 0xb3f   : > { %1788 = vrot.lane.b32.xlu1 %v3254_v2, %s2897_s17  ;;  %1955 = vrot.lane.b32.xlu0 %v3254_v2, %s2898_s18  ;;  %s3445_s18 = sshll.u32 %s3447_s22, 3 }
 0xb43   : > { %1953 = vrot.lane.b32.xlu1 %v3254_v2, %s2899_s19 }
 0xba9   : > { %v1626_v26 = vpop.permute.xlu1 %1625  ;;  %v1461_v3 = vpop.permute.xlu0 %1460 }
 0xbaa   : > { %2736 = vmatpush3.xpose.msk.msra.mxu1 %vm391_vm2, %v1461_v3  ;;  %2746 = vmatpush3.xpose.msk.msra.mxu0 %vm391_vm2, %v1626_v26 }
 0xbab   : > { %2755 = vmatprep.subr.mxu0 %v2891_v8  ;;  %2740 = vmatprep.subr.mxu1 %v2891_v8 }
 0xbad   : > { %v1624_v4 = vpop.permute.xlu1 %1623  ;;  %2738 = vmatmul.mubr.msk.f32.vlgmr.msra.gmra.mxu1 %vm391_vm2, %v3254_v2  ;;  %v1791_v5 = vpop.permute.xlu0 %1790 }
 0xbae   : > { %2748 = vmatmul.mubr.msk.f32.vlgmr.msra.gmra.mxu0 %vm391_vm2, %v1624_v4  ;;  %2742 = vmatprep.mubr.msk.f32.mxu1 %vm2892_vm1, %v2891_v8 }
 0xbaf   : > { %2756 = vmatpush3.xpose.msk.msra.mxu0 %vm391_vm2, %v1791_v5  ;;  %2757 = vmatprep.mubr.msk.f32.mxu0 %vm2892_vm1, %v2891_v8 }
 0xbb0   : > { %2765 = vmatprep.subr.mxu0 %v2891_v8 }
 0xbb1   : > { %v1789_v6 = vpop.permute.xlu1 %1788  ;;  %v1956_v12 = vpop.permute.xlu0 %1955 }
 0xbb2   : > { %2758 = vmatmul.mubr.msk.f32.vlgmr.msra.gmra.mxu0 %vm391_vm2, %v1789_v6 }
 0xbb3   : > { %2766 = vmatpush3.xpose.msk.msra.mxu0 %vm391_vm2, %v1956_v12  ;;  %2767 = vmatprep.mubr.msk.f32.mxu0 %vm2892_vm1, %v2891_v8 }
 0xbb4   : > { %2775 = vmatprep.subr.mxu0 %v2891_v8 }
 0xbb5   : > { %v1954_v13 = vpop.permute.xlu1 %1953 }
 0xbb6   : > { %2768 = vmatmul.mubr.msk.f32.vlgmr.msra.gmra.mxu0 %vm391_vm2, %v1954_v13 }
 0xbb7   : > { %2783 = vmatprep.mubr.msk.f32.mxu0 %vm2892_vm1, %v2891_v8 }
 0xc6d   : > { %v1532_v14 = vpop.f32.mrf.mxu1 }
 0xc6e   : > { %v1533_v15 = vadd.f32 %v3064_v38, %v1532_v14  ;;  %v1697_v20 = vpop.f32.mrf.mxu0 }
 0xc6f   : > { %v1698_v21 = vadd.f32 %v3064_v38, %v1697_v20  ;;  %v2739_v24 = vpop.f32.mrf.mxu1 }
 0xc70   : > { %v2749_v25 = vpop.f32.mrf.mxu0  ;;  %v1536_v27 = vsel %vm391_vm2, %v1533_v15, -inf }
 0xc71   : > { %1537 = vmax.xlane.f32.xlu0 %v1536_v27  ;;  %v1701_v28 = vsel %vm391_vm2, %v1698_v21, -inf }
 0xc72   : > { %1702 = vmax.xlane.f32.xlu1 %v1701_v28  ;;  %v1862_v30 = vpop.f32.mrf.mxu0 }
 0xc73   : > { %v1863_v31 = vadd.f32 %v3064_v38, %v1862_v30 }
 0xc74   : > { %v2759_v32 = vpop.f32.mrf.mxu0 }
 0xc75   : > { %v1866_v33 = vsel %vm391_vm2, %v1863_v31, -inf }
 0xc76   : > { %v2027_v29 = vpop.f32.mrf.mxu0  ;;  %1867 = vmax.xlane.f32.xlu0 %v1866_v33 }
 0xc77   : > { %v2028_v35 = vadd.f32 %v3064_v38, %v2027_v29 }
 0xc78   : > { %v2769_v36 = vpop.f32.mrf.mxu0 }
 0xc79   : > { %v2031_v37 = vsel %vm391_vm2, %v2028_v35, -inf }
 0xc7a   : > { %2032 = vmax.xlane.f32.xlu0 %v2031_v37 }
 0xc83   : > { %1547 = vrot.lane.b32.xlu1 %v3254_v2, %s2900_s26 }
 0xcfa   : > { %v1538_v39 = vpop.xlane.xlu0 %1537 }
 0xcfb   : > { %v1539_v40 = vsub.f32 %v1533_v15, %v1538_v39  ;;  %v1703_v42 = vpop.xlane.xlu1 %1702 }
 0xcfc   : > { %v1704_v7 = vsub.f32 %v1698_v21, %v1703_v42 }
 0xcfd   : > { %v1540_v43 = vmul.f32 1.442695, %v1539_v40 }
 0xcfe   : > { %v1705_v9 = vmul.f32 1.442695, %v1704_v7 }
 0xcff   : > { %2863 = vpow2.f32 %v1540_v43  ;;  %v1548_v44 = vpop.permute.xlu1 %1547  ;;  %v1868_v45 = vpop.xlane.xlu0 %1867 }
 0xd00   : > { %2865 = vpow2.f32 %v1705_v9  ;;  %v1869_v46 = vsub.f32 %v1863_v31, %v1868_v45  ;;  %2741 = vmatpush3.msra.mxu1 %v1548_v44 }
 0xd01   : > { %2750 = vmatprep.subr.mxu1 %v2891_v8 }
 0xd02   : > { %v1870_v38 = vmul.f32 1.442695, %v1869_v46 }
 0xd03   : > { %v2033_v47 = vpop.xlane.xlu0 %2032 }
 0xd04   : > { %2867 = vpow2.f32 %v1870_v38  ;;  %v2034_v48 = vsub.f32 %v2028_v35, %v2033_v47 }
 0xd06   : > { %v2035_v49 = vmul.f32 1.442695, %v2034_v48 }
 0xd08   : > { %2869 = vpow2.f32 %v2035_v49  ;;  %v2520_v49 = vld [vmem:[%s3437_s2 + $0x58] sm:$0xff] }
 0xd0c   : > { %v2864_v11 = vpop.eup %2863 }
 0xd0d   : > { %v2866_v54 = vpop.eup %2865  ;;  %v1542_v55 = vsel %vm391_vm2, %v2864_v11, 0.0 }
 0xd0e   : > { %1543 = vadd.xlane.f32.xlu1 %v1542_v55  ;;  %v1707_v57 = vsel %vm391_vm2, %v2866_v54, 0.0  ;;  %v2531_v55 = vld [vmem:[%s3438_s3 + $0x70] sm:$0xff] }
 0xd0f   : > { %1708 = vadd.xlane.f32.xlu0 %v1707_v57  ;;  %v2530_v57 = vld [vmem:[%s3438_s3 + $0x68] sm:$0xff] }
 0xd11   : > { %v2868_v58 = vpop.eup %2867 }
 0xd12   : > { %v1872_v59 = vsel %vm391_vm2, %v2868_v58, 0.0 }
 0xd13   : > { %1873 = vadd.xlane.f32.xlu1 %v1872_v59  ;;  %v2528_v59 = vld [vmem:[%s3438_s3 + $0x58] sm:$0xff] }
 0xd15   : > { %v2870_v60 = vpop.eup %2869 }
 0xd16   : > { %v2037_v61 = vsel %vm391_vm2, %v2870_v60, 0.0 }
 0xd17   : > { %2038 = vadd.xlane.f32.xlu0 %v2037_v61 }
 0xd24   : > { %1877 = vrot.lane.b32.xlu1 %v3254_v2, %s2901_s27  ;;  %s260_s27 = scalar_lea.vmem %s3441_s6, %s3445_s18 }
 0xd28   : > { %2042 = vrot.lane.b32.xlu1 %v3254_v2, %s2902_s28 }
 0xd2c   : > { %2145 = vrot.lane.b32.xlu1 %v3220_v50, %s2904_s30 }
 0xd2d   : > { %1712 = vrot.lane.b32.xlu0 %v3254_v2, %s2903_s29 }
 0xd30   : > { %2143 = vrot.lane.b32.xlu1 %v3226_v51, %s2904_s30 }
 0xd31   : > { %2147 = vrot.lane.b32.xlu0 %v3214_v18, %s2904_s30 }
 0xd97   : > { %v1544_v62 = vpop.xlane.xlu1 %1543 }
 0xd98   : > { %2871 = vrcp.f32 %v1544_v62  ;;  %v1709_v63 = vpop.xlane.xlu0 %1708 }
 0xd99   : > { %2873 = vrcp.f32 %v1709_v63  ;;  %v2243_v63 = vrot.slane %v3242_v56, %v1174_v22  ;;  %v2526_v22 = vld [vmem:[%s3438_s3 + $0x48] sm:$0xff] }
 0xd9c   : > { %v1874_v1 = vpop.xlane.xlu1 %1873 }
 0xd9d   : > { %2875 = vrcp.f32 %v1874_v1 }
 0xda0   : > { %v2039_v0 = vpop.xlane.xlu0 %2038  ;;  %v1878_v51 = vpop.permute.xlu1 %1877 }
 0xda1   : > { %2877 = vrcp.f32 %v2039_v0 }
 0xda4   : > { %v1713_v4 = vpop.permute.xlu0 %1712  ;;  %v2043_v12 = vpop.permute.xlu1 %2042 }
 0xda5   : > { %v2872_v26 = vpop.eup %2871 }
 0xda6   : > { %v1546_v3 = vmul.f32 %v2872_v26, %v2864_v11  ;;  %v2874_v50 = vpop.eup %2873  ;;  %v2518_v11 = vld [vmem:[%s3437_s2 + $0x48] sm:$0xff]  ;;  %v2248_v26 = vrot.slane %v3242_v56, %v1179_v23  ;;  %v2525_v23 = vld [vmem:[%s3438_s3 + $0x40] sm:$0xff] }
 0xda7   : > { %v1711_v18 = vmul.f32 %v2874_v50, %v2866_v54  ;;  %v2532_v54 = vld [vmem:[%s3438_s3 + $0x78] sm:$0xff] }
 0xda8   : > { %2743 = vmatmul.mubr.msk.f32.vlgmr.msra.gmra.mxu1 %vm391_vm2, %v1546_v3  ;;  %v2148_v14 = vpop.permute.xlu0 %2147  ;;  %v2146_v15 = vpop.permute.xlu1 %2145 }
 0xda9   : > { %2751 = vmatpush3.msra.mxu1 %v1713_v4  ;;  %2752 = vmatprep.mubr.msk.f32.mxu1 %vm2892_vm1, %v2891_v8  ;;  %v2527_v4 = vld [vmem:[%s3438_s3 + $0x50] sm:$0xff] }
 0xdaa   : > { %2760 = vmatprep.subr.mxu1 %v2891_v8  ;;  %v2876_v2 = vpop.eup %2875  ;;  %2776 = vmatpush3.msra.mxu0 %v2148_v14 }
 0xdab   : > { %v1876_v5 = vmul.f32 %v2876_v2, %v2868_v58  ;;  %2777 = vmatprep.subr.mxu0 %v2891_v8  ;;  %v2529_v58 = vld [vmem:[%s3438_s3 + $0x60] sm:$0xff] }
 0xdac   : > { %2753 = vmatmul.mubr.msk.f32.vlgmr.msra.gmra.mxu1 %vm391_vm2, %v1711_v18  ;;  %2778 = vmatpush3.msra.mxu0 %v2146_v15  ;;  %v2144_v20 = vpop.permute.xlu1 %2143 }
 0xdad   : > { %2761 = vmatpush3.msra.mxu1 %v1878_v51  ;;  %2762 = vmatprep.mubr.msk.f32.mxu1 %vm2892_vm1, %v2891_v8  ;;  %v2253_v51 = vrot.slane %v3242_v56, %v1184_v34 }
 0xdae   : > { %2770 = vmatprep.subr.mxu1 %v2891_v8  ;;  %v2878_v6 = vpop.eup %2877  ;;  %2779 = vmatprep.subr.mxu0 %v2891_v8 }
 0xdaf   : > { %v2041_v13 = vmul.f32 %v2878_v6, %v2870_v60  ;;  %2780 = vmatpush3.msra.mxu0 %v2144_v20 }
 0xdb0   : > { %2763 = vmatmul.mubr.msk.f32.vlgmr.msra.gmra.mxu1 %vm391_vm2, %v1876_v5  ;;  %2781 = vmatprep.subr.mxu0 %v2891_v8 }
 0xdb1   : > { %2771 = vmatpush3.msra.mxu1 %v2043_v12  ;;  %2772 = vmatprep.mubr.msk.f32.mxu1 %vm2892_vm1, %v2891_v8  ;;  %v2331_v12 = vrot.slane %v3242_v56, %v1262_v41  ;;  %v2406_v41 = vld [vmem:[%s3440_s5] sm:$0x3] }
 0xdb2   : > { %2786 = vmatprep.subr.mxu1 %v2891_v8 }
 0xdb4   : > { %2773 = vmatmul.mubr.msk.f32.vlgmr.msra.gmra.mxu1 %vm391_vm2, %v2041_v13 }
 0xdb5   : > { %2794 = vmatprep.mubr.msk.f32.mxu1 %vm2892_vm1, %v2891_v8 }
 0xe68   : > { %v1619_v21 = vpop.f32.mrf.mxu1 }
 0xe6a   : > { %v2744_v24 = vpop.f32.mrf.mxu1 }
 0xe6c   : > { %v1784_v25 = vpop.f32.mrf.mxu1 }
 0xe6d   : > { %2119 = vrot.lane.b32.xlu0 %v1784_v25, %s2905_s7 }
 0xe6e   : > { %v2754_v27 = vpop.f32.mrf.mxu1 }
 0xe70   : > { %v1949_v28 = vpop.f32.mrf.mxu1 }
 0xe71   : > { %2123 = vrot.lane.b32.xlu0 %v1949_v28, %s2906_s8 }
 0xe72   : > { %v2764_v30 = vpop.f32.mrf.mxu1 }
 0xe74   : > { %v2114_v31 = vpop.f32.mrf.mxu1 }
 0xe75   : > { %2141 = vrot.lane.b32.xlu0 %v3233_v52, %s2904_s30  ;;  %2127 = vrot.lane.b32.xlu1 %v2114_v31, %s3444_s13  ;;  %v2136_v52 = vrot.slane %v3242_v56, %v1067_v53  ;;  %v2524_v53 = vld [vmem:[%s3437_s2 + $0x78] sm:$0xff]  ;;  %v2423_v56 = vrot.slane %v2406_v41, %v3002_v17 }
 0xe76   : > { %v2774_v32 = vpop.f32.mrf.mxu1  ;;  %2787 = vmatpush3.msra.mxu1 %v2524_v53 }
 0xe77   : > { %2788 = vmatprep.subr.mxu1 %v2891_v8  ;;  %v2428_v32 = vrot.slane %v2406_v41, %v3010_v19 }
 0xedf   : > { %v2120_v33 = vpop.permute.xlu0 %2119 }
 0xee0   : > { %v2130_v35 = vsel %vm391_vm2, %v1619_v21, %v2120_v33 }
 0xee3   : > { %v2124_v29 = vpop.permute.xlu0 %2123 }
 0xee4   : > { %v2131_v36 = vsel %vm1061_vm3, %v2130_v35, %v2124_v29 }
 0xee7   : > { %v2142_v37 = vpop.permute.xlu0 %2141  ;;  %v2128_v39 = vpop.permute.xlu1 %2127 }
 0xee8   : > { %v2132_v40 = vsel %vm1063_vm4, %v2131_v36, %v2128_v39  ;;  %2782 = vmatpush3.msra.mxu0 %v2142_v37 }
 0xee9   : > { %2784 = vmatmul.mubr.msk.f32.vlgmr.msra.gmra.mxu0 %vm280_vm0, %v2132_v40  ;;  %2797 = vmatprep.subr.mxu0 %v2891_v8 }
 0xeea   : > { %2813 = vmatprep.mubr.msk.f32.mxu0 %vm2892_vm1, %v2891_v8  ;;  %2798 = vmatpush3.msra.mxu0 %v2532_v54 }
 0xeeb   : > { %2799 = vmatprep.subr.mxu0 %v2891_v8 }
 0xeec   : > { %2800 = vmatpush3.msra.mxu0 %v2531_v55 }
 0xeed   : > { %2801 = vmatprep.subr.mxu0 %v2891_v8 }
 0xeee   : > { %2802 = vmatpush3.msra.mxu0 %v2530_v57 }
 0xeef   : > { %2803 = vmatprep.subr.mxu0 %v2891_v8 }
 0xef0   : > { %2804 = vmatpush3.msra.mxu0 %v2529_v58 }
 0xef1   : > { %2805 = vmatprep.subr.mxu0 %v2891_v8 }
 0xef2   : > { %2806 = vmatpush3.msra.mxu0 %v2528_v59 }
 0xef3   : > { %2807 = vmatprep.subr.mxu0 %v2891_v8 }
 0xef4   : > { %2808 = vmatpush3.msra.mxu0 %v2527_v4 }
 0xef5   : > { %2809 = vmatprep.subr.mxu0 %v2891_v8 }
 0xef6   : > { %2810 = vmatpush3.msra.mxu0 %v2526_v22 }
 0xef7   : > { %2811 = vmatprep.subr.mxu0 %v2891_v8 }
 0xef8   : > { %2812 = vmatpush3.msra.mxu0 %v2525_v23 }
 0xfa9   : > { %v2222_v42 = vpop.f32.mrf.mxu0 }
 0xfaa   : > { %v2223_v7 = vadd.f32 %v2222_v42, %v2136_v52 }
 0xfab   : > { %v2785_v43 = vpop.f32.mrf.mxu0 }
 0xfac   : > { %v3352_v9 = vadd.f32 %v2223_v7, %v3205_v10  ;;  %v2522_v10 = vld [vmem:[%s3437_s2 + $0x68] sm:$0xff] }
 0xfad   : > { %2789 = vmatpush3.msra.mxu1 %v2522_v10 }
 0xfae   : > { %v2227_v44 = vsel %vm280_vm0, %v3352_v9, 0.0  ;;  %2790 = vmatprep.subr.mxu1 %v2891_v8 }
 0xfaf   : > { %2228 = vadd.xlane.f32.xlu1 %v2227_v44  ;;  %2791 = vmatpush3.msra.mxu1 %v2520_v49 }
 0xfb0   : > { %2792 = vmatprep.subr.mxu1 %v2891_v8 }
 0xfb1   : > { %2793 = vmatpush3.msra.mxu1 %v2518_v11 }
0x1038   : > { %v2229_v45 = vpop.xlane.xlu1 %2228 }
0x1039   : > { %v2230_v46 = vmul.f32 0.03125, %v2229_v45 }
0x103b   : > { %v2231_v38 = vsub.f32 %v3352_v9, %v2230_v46 }
0x103d   : > { %v2232_v47 = vmul.f32 %v2231_v38, %v2231_v38 }
0x103f   : > { %v2233_v48 = vsel %vm280_vm0, %v2232_v47, 0.0 }
0x1040   : > { %2234 = vadd.xlane.f32.xlu0 %v2233_v48 }
0x10c9   : > { %v2235_v60 = vpop.xlane.xlu0 %2234 }
0x10ca   : > { %v2236_v61 = vmul.f32 0.03125, %v2235_v60 }
0x10cc   : > { %v2237_v62 = vadd.f32 1e-06, %v2236_v61 }
0x10ce   : > { %2879 = vrsqrt.f32 %v2237_v62 }
0x10db   : > { %v2880_v1 = vpop.eup %2879 }
0x10dc   : > { %v2239_v0 = vmul.f32 %v2880_v1, %v2231_v38 }
0x10de   : > { %v2244_v3 = vmul.f32 %v2243_v63, %v2239_v0 }
0x10e0   : > { %v2249_v50 = vadd.f32 %v2248_v26, %v2244_v3 }
0x10e2   : > { %2795 = vmatmul.mubr.msk.f32.vlgmr.msra.gmra.mxu1 %vm280_vm0, %v2249_v50 }
0x11a2   : > { %v2323_v18 = vpop.f32.mrf.mxu1 }
0x11a3   : > { %v2324_v2 = vadd.f32 %v2323_v18, %v2253_v51 }
0x11a4   : > { %v2796_v5 = vpop.f32.mrf.mxu1 }
0x11a5   : > { %v2327_v6 = vmax.f32 %v2324_v2, 0.0 }
0x11a7   : > { %2814 = vmatmul.mubr.msk.f32.vlgmr.msra.gmra.mxu0 %vm1264_vm5, %v2327_v6 }
0x1267   : > { %v2401_v13 = vpop.f32.mrf.mxu0 }
0x1268   : > { %v2402_v14 = vadd.f32 %v2401_v13, %v2331_v12 }
0x1269   : > { %v2815_v15 = vpop.f32.mrf.mxu0 }
0x126a   : > { %v2405_v8 = vadd.f32 %v2402_v14, %v3352_v9 }
0x126c   : > { %v2407_v20 = vsel %vm280_vm0, %v2405_v8, 0.0 }
0x126d   : > { %2408 = vadd.xlane.f32.xlu0 %v2407_v20 }
0x12f6   : > { %v2409_v21 = vpop.xlane.xlu0 %2408 }
0x12f7   : > { %v2410_v34 = vmul.f32 0.03125, %v2409_v21 }
0x12f9   : > { %v2411_v24 = vsub.f32 %v2405_v8, %v2410_v34 }
0x12fb   : > { %v2412_v25 = vmul.f32 %v2411_v24, %v2411_v24 }
0x12fd   : > { %v2413_v27 = vsel %vm280_vm0, %v2412_v25, 0.0 }
0x12fe   : > { %2414 = vadd.xlane.f32.xlu1 %v2413_v27 }
0x1387   : > { %v2415_v28 = vpop.xlane.xlu1 %2414 }
0x1388   : > { %v2416_v16 = vmul.f32 0.03125, %v2415_v28 }
0x138a   : > { %v2417_v30 = vadd.f32 1e-06, %v2416_v16 }
0x138c   : > { %2881 = vrsqrt.f32 %v2417_v30 }
0x1399   : > { %v2882_v31 = vpop.eup %2881 }
0x139a   : > { %v2419_v33 = vmul.f32 %v2882_v31, %v2411_v24 }
0x139c   : > { %v2424_v29 = vmul.f32 %v2423_v56, %v2419_v33 }
0x139e   : > { %v2429_v35 = vadd.f32 %v2428_v32, %v2424_v29 }
0x13a0   : > { %2430 = vst.msk [vmem:[%s260_s27] sm:$0xff] %vm280_vm0, %v2429_v35 }
0x13a1 PF: > { %s16_s21 = sadd.s32 1, %s2889_s21  }
0x13a2   : > { %p13_p4 = scmp.ge.s32.totalorder %s16_s21, 4  }
0x13a4   :  { %15 = sbr.rel (!%p13_p4) target bundleno = 1 (0x1), region = 80 }

</bundles_post_ra>
